<compile_context>
chip_gen: v7x
topology: tpu7x:2x2x1
jax: 0.10.0
libtpu: 0.0.40
codegen_flags: <defaults>
</compile_context>

<pallas_src>
import functools

import jax
import jax.numpy as jnp
from jax.experimental import pallas as pl
from jax.experimental.pallas import tpu as pltpu


_PARALLEL1 = pltpu.CompilerParams(dimension_semantics=("parallel",))


# --------------------------------------------------------------------------
# In-kernel helpers
# --------------------------------------------------------------------------
def _gn(y, eps):
    """GroupNorm (affine=False) over the whole (HW, Cg) tile, single pass."""
    inv_n = 1.0 / y.size
    mean = jnp.sum(y) * inv_n
    var = jnp.sum(y * y) * inv_n - mean * mean          # E[x^2] - E[x]^2 (one pass)
    return (y - mean) * jax.lax.rsqrt(jnp.maximum(var, 0.0) + eps)


def _grouped_conv3x3_gn(tap, w_ref, G, HW, eps, relu):
    """Grouped 3x3 conv + GroupNorm (+ ReLU) as one concat-K matmul per group.

    tap(dh, dw, g) -> (Ho, Wo, Cin_g) bf16 slice of the padded / polyphase input.
    w_ref: (G, 9*Cin_g, Cout_g) bf16 (concat-K weight layout).
    Returns (HW, G*Cout_g) f32 with groups concatenated (lane-dense).
    """
    outs = []
    for g in range(G):
        patch = jnp.concatenate(
            [tap(dh, dw, g).reshape(HW, -1) for dh in range(3) for dw in range(3)],
            axis=-1)                                               # (HW, 9*Cin_g)
        y = jnp.dot(patch, w_ref[g], preferred_element_type=jnp.float32)
        y = _gn(y, eps)
        outs.append(jnp.maximum(y, 0.0) if relu else y)
    return outs[0] if G == 1 else jnp.concatenate(outs, axis=-1)   # (HW, C)


def _store_padded(o_ref, y, Ho, Wo):
    """Store y (HW, C) into o_ref (Ho+2, Wo+2, C) with zero borders (pre-padded
    for the following 3x3 conv, so no wrapper-side pad pass is needed)."""
    o_ref[...] = jnp.zeros_like(o_ref)
    o_ref[1:1 + Ho, 1:1 + Wo, :] = y.reshape(Ho, Wo, -1).astype(o_ref.dtype)


# --------------------------------------------------------------------------
# Kernel 1: conv1 (3x3, stride s, grouped) + GN + ReLU, output pre-padded;
#           fused 1x1 shortcut conv + GN when the block downsamples.
# --------------------------------------------------------------------------
def _conv1_kernel(*refs, G, Ho, Wo, stride, downsample, eps):
    if stride == 1:
        if downsample:
            x_ref, w1_ref, wsc_ref, o_ref, sc_ref, xpad_ref = refs
        else:
            x_ref, w1_ref, o_ref, xpad_ref = refs
    else:  # stride == 2  ->  shortcut conv is always present
        ph_ref, w1_ref, wsc_ref, o_ref, sc_ref = refs

    cin_g = w1_ref.shape[1] // 9
    HW = Ho * Wo

    if stride == 1:
        # In-kernel halo handling: stage x into a zero-initialized padded VMEM tile.
        xpad_ref[...] = jnp.zeros_like(xpad_ref)
        xpad_ref[1:1 + Ho, 1:1 + Wo, :] = x_ref[...]

        def tap(dh, dw, g):
            return xpad_ref[dh:dh + Ho, dw:dw + Wo, g * cin_g:(g + 1) * cin_g]

        def sc_in(g):                      # 1x1 stride-1 shortcut conv input = x
            return x_ref[:, :, g * cin_g:(g + 1) * cin_g]
    else:
        # Polyphase stride-2: every tap is a contiguous shifted slice of one component.
        def tap(dh, dw, g):
            pq = (dh % 2) * 2 + (dw % 2)
            return ph_ref[pq, dh // 2:dh // 2 + Ho, dw // 2:dw // 2 + Wo,
                          g * cin_g:(g + 1) * cin_g]

        def sc_in(g):                      # x[::2, ::2] == polyphase component (1, 1)
            return ph_ref[3, 0:Ho, 0:Wo, g * cin_g:(g + 1) * cin_g]

    y = _grouped_conv3x3_gn(tap, w1_ref, G, HW, eps, relu=True)     # (HW, C) f32
    _store_padded(o_ref, y, Ho, Wo)

    if downsample:
        scs = []
        for g in range(G):
            s = jnp.dot(sc_in(g).reshape(HW, -1), wsc_ref[g],
                        preferred_element_type=jnp.float32)
            scs.append(_gn(s, eps))
        s = scs[0] if G == 1 else jnp.concatenate(scs, axis=-1)
        sc_ref[...] = s.reshape(Ho, Wo, -1).astype(sc_ref.dtype)


# --------------------------------------------------------------------------
# Kernel 2: conv2 (3x3, stride 1, grouped, input already padded) + GN
#           + residual add (identity x or pre-computed shortcut) + ReLU.
# --------------------------------------------------------------------------
def _conv2_kernel(y1p_ref, w2_ref, sc_ref, o_ref, *, G, Ho, Wo, eps):
    cg = w2_ref.shape[2]
    HW = Ho * Wo

    def tap(dh, dw, g):                    # y1p was zero-padded by kernel 1
        return y1p_ref[dh:dh + Ho, dw:dw + Wo, g * cg:(g + 1) * cg]

    y = _grouped_conv3x3_gn(tap, w2_ref, G, HW, eps, relu=False)    # (HW, C) f32
    out = jnp.maximum(y + sc_ref[...].reshape(HW, -1).astype(jnp.float32), 0.0)
    o_ref[...] = out.reshape(Ho, Wo, -1).astype(o_ref.dtype)


# --------------------------------------------------------------------------
# pallas_call wrappers
# --------------------------------------------------------------------------
def _call_conv1(conv1_in, w1, wsc, *, stride, H, W, Ho, Wo, G, C_in, planes, eps):
    N = conv1_in.shape[0]
    downsample = wsc is not None
    kern = functools.partial(_conv1_kernel, G=G, Ho=Ho, Wo=Wo, stride=stride,
                             downsample=downsample, eps=eps)

    if stride == 1:
        in_specs = [pl.BlockSpec((None, H, W, C_in), lambda n: (n, 0, 0, 0))]
        scratch = [pltpu.VMEM((H + 2, W + 2, C_in), jnp.bfloat16)]
    else:
        SS, Hh, Wh = conv1_in.shape[1], conv1_in.shape[2], conv1_in.shape[3]
        in_specs = [pl.BlockSpec((None, SS, Hh, Wh, C_in), lambda n: (n, 0, 0, 0, 0))]
        scratch = []

    in_specs.append(pl.BlockSpec(w1.shape, lambda n: (0, 0, 0)))     # resident weights
    args = [conv1_in, w1]
    if downsample:
        in_specs.append(pl.BlockSpec(wsc.shape, lambda n: (0, 0, 0)))
        args.append(wsc)

    out_shape = [jax.ShapeDtypeStruct((N, Ho + 2, Wo + 2, planes), jnp.bfloat16)]
    out_specs = [pl.BlockSpec((None, Ho + 2, Wo + 2, planes), lambda n: (n, 0, 0, 0))]
    if downsample:
        out_shape.append(jax.ShapeDtypeStruct((N, Ho, Wo, planes), jnp.bfloat16))
        out_specs.append(pl.BlockSpec((None, Ho, Wo, planes), lambda n: (n, 0, 0, 0)))

    return pl.pallas_call(
        kern,
        grid=(N,),
        in_specs=in_specs,
        out_specs=tuple(out_specs) if downsample else out_specs[0],
        out_shape=tuple(out_shape) if downsample else out_shape[0],
        scratch_shapes=scratch,
        compiler_params=_PARALLEL1,
    )(*args)


def _call_conv2(y1p, w2, sc, *, Ho, Wo, G, planes, eps):
    N = y1p.shape[0]
    kern = functools.partial(_conv2_kernel, G=G, Ho=Ho, Wo=Wo, eps=eps)
    return pl.pallas_call(
        kern,
        grid=(N,),
        in_specs=[
            pl.BlockSpec((None, Ho + 2, Wo + 2, planes), lambda n: (n, 0, 0, 0)),
            pl.BlockSpec(w2.shape, lambda n: (0, 0, 0)),             # resident weights
            pl.BlockSpec((None, Ho, Wo, planes), lambda n: (n, 0, 0, 0)),
        ],
        out_specs=pl.BlockSpec((None, Ho, Wo, planes), lambda n: (n, 0, 0, 0)),
        out_shape=jax.ShapeDtypeStruct((N, Ho, Wo, planes), jnp.float32),
        compiler_params=_PARALLEL1,
    )(y1p, w2, sc)


# --------------------------------------------------------------------------
# BasicBlock forward (Pallas) + parameter init
# --------------------------------------------------------------------------
def init_basic_block_params(key, in_planes, planes, stride=1, groups=1):
    k1, k2, k3 = jax.random.split(key, 3)
    cin_g, cout_g = in_planes // groups, planes // groups
    params = {
        "w1": 0.1 * jax.random.normal(k1, (groups, 3, 3, cin_g, cout_g), jnp.float32),
        "w2": 0.1 * jax.random.normal(k2, (groups, 3, 3, cout_g, cout_g), jnp.float32),
    }
    if stride != 1 or in_planes != planes:
        params["w_sc"] = 0.1 * jax.random.normal(k3, (groups, cin_g, cout_g), jnp.float32)
    return params


@functools.partial(jax.jit, static_argnames=("stride", "groups"))
def basic_block_forward(x_nchw, params, stride=1, groups=1, eps=1e-5):
    N, C_in, H, W = x_nchw.shape
    G = groups
    cin_g = C_in // G
    cout_g = params["w1"].shape[-1]
    planes = G * cout_g
    Ho, Wo = H // stride, W // stride

    # Weights: (G, 3, 3, cin, cout) -> (G, 9*cin, cout) concat-K layout, bf16 for the MXU.
    w1 = params["w1"].reshape(G, 9 * cin_g, cout_g).astype(jnp.bfloat16)
    w2 = params["w2"].reshape(G, 9 * cout_g, cout_g).astype(jnp.bfloat16)
    wsc = params.get("w_sc")
    if wsc is not None:
        wsc = wsc.astype(jnp.bfloat16)                         # (G, cin_g, cout_g)

    # NCHW -> NHWC (full channel count on the lane axis), bf16 activation stream.
    x = jnp.transpose(x_nchw, (0, 2, 3, 1)).astype(jnp.bfloat16)

    if stride == 1:
        conv1_in = x                                           # halo handled in-kernel
    else:
        assert stride == 2 and H % 2 == 0 and W % 2 == 0, "stride=2 requires even H, W"
        Hh, Wh = (H + 2) // 2, (W + 2) // 2
        xp = jnp.pad(x, ((0, 0), (1, 1), (1, 1), (0, 0)))
        conv1_in = (xp.reshape(N, Hh, 2, Wh, 2, C_in)
                      .transpose(0, 2, 4, 1, 3, 5)
                      .reshape(N, 4, Hh, Wh, C_in))            # polyphase components

    if wsc is not None:
        # Downsample block: kernel 1 also emits the normalized 1x1-conv shortcut.
        y1p, sc = _call_conv1(conv1_in, w1, wsc, stride=stride, H=H, W=W, Ho=Ho, Wo=Wo,
                              G=G, C_in=C_in, planes=planes, eps=eps)
    else:
        y1p = _call_conv1(conv1_in, w1, None, stride=stride, H=H, W=W, Ho=Ho, Wo=Wo,
                          G=G, C_in=C_in, planes=planes, eps=eps)
        sc = x                                                 # identity shortcut (bf16)

    out = _call_conv2(y1p, w2, sc, Ho=Ho, Wo=Wo, G=G, planes=planes, eps=eps)
    return jnp.transpose(out, (0, 3, 1, 2))                    # (N, planes, Ho, Wo) f32


# --------------------------------------------------------------------------
# Pure-JAX reference (for correctness check)
# --------------------------------------------------------------------------
def _ref_conv(x_nchw, w_g, stride, pad):
    G = w_g.shape[0]
    ws = [jnp.transpose(w_g[g], (3, 2, 0, 1)) if w_g.ndim == 5
          else jnp.transpose(w_g[g], (1, 0))[:, :, None, None] for g in range(G)]
    w = jnp.concatenate(ws, axis=0)  # OIHW
    return jax.lax.conv_general_dilated(
        x_nchw, w, (stride, stride), [(pad, pad), (pad, pad)],
        dimension_numbers=("NCHW", "OIHW", "NCHW"), feature_group_count=G)


def _ref_gn(x_nchw, groups, relu=False, eps=1e-5):
    N, C, H, W = x_nchw.shape
    xg = x_nchw.reshape(N, groups, -1)
    mean = xg.mean(-1, keepdims=True)
    var = ((xg - mean) ** 2).mean(-1, keepdims=True)
    y = ((xg - mean) / jnp.sqrt(var + eps)).reshape(N, C, H, W)
    return jnp.maximum(y, 0.0) if relu else y


def ref_forward(x_nchw, params, stride=1, groups=1):
    out = _ref_gn(_ref_conv(x_nchw, params["w1"], stride, 1), groups, relu=True)
    out = _ref_gn(_ref_conv(out, params["w2"], 1, 1), groups, relu=False)
    if "w_sc" in params:
        sc = _ref_gn(_ref_conv(x_nchw, params["w_sc"], stride, 0), groups, relu=False)
    else:
        sc = x_nchw
    return jnp.maximum(out + sc, 0.0)


# --------------------------------------------------------------------------
if __name__ == "__main__":
    key = jax.random.PRNGKey(0)
    kx1, kp1, kx2, kp2 = jax.random.split(key, 4)

    # Config 1: downsample shortcut (stride=2, channel expansion), groups=1.
    N, in_planes, planes, H, W = 2, 4, 8, 16, 16
    stride, groups = 2, 1
    x = jax.random.normal(kx1, (N, in_planes, H, W), jnp.float32)
    params = init_basic_block_params(kp1, in_planes, planes, stride=stride, groups=groups)
    out = jax.block_until_ready(basic_block_forward(x, params, stride=stride, groups=groups))
    ref = jax.block_until_ready(ref_forward(x, params, stride=stride, groups=groups))
    assert out.shape == ref.shape == (N, planes, H // stride, W // stride), out.shape
    assert jnp.allclose(out, ref, rtol=5e-2, atol=5e-2), \
        f"max err {float(jnp.max(jnp.abs(out - ref)))}"

    # Config 2: identity shortcut, grouped conv/GN (groups=2), stride=1.
    in2, planes2, stride2, groups2 = 8, 8, 1, 2
    x2 = jax.random.normal(kx2, (N, in2, H, W), jnp.float32)
    params2 = init_basic_block_params(kp2, in2, planes2, stride=stride2, groups=groups2)
    out2 = jax.block_until_ready(basic_block_forward(x2, params2, stride=stride2, groups=groups2))
    ref2 = jax.block_until_ready(ref_forward(x2, params2, stride=stride2, groups=groups2))
    assert out2.shape == ref2.shape == (N, planes2, H, W), out2.shape
    assert jnp.allclose(out2, ref2, rtol=5e-2, atol=5e-2), \
        f"max err {float(jnp.max(jnp.abs(out2 - ref2)))}"

    print("KERNEL_OK")
</pallas_src>

<mosaic_0001>
module attributes {stable_mosaic.version = 11 : i64} {
  func.func @_conv2_kernel(%arg0: i32, %arg1: memref<1x10x10x8xbf16, #tpu.memory_space<vmem>>, %arg2: memref<1x72x8xbf16, #tpu.memory_space<vmem>>, %arg3: memref<1x8x8x8xbf16, #tpu.memory_space<vmem>>, %arg4: memref<1x8x8x8xf32, #tpu.memory_space<vmem>>) attributes {dimension_semantics = [#tpu.dimension_semantics<parallel>], iteration_bounds = array<i64: 2>, scalar_prefetch = 0 : i64, scratch_operands = 0 : i64, tpu.core_type = #tpu.core_type<tc>, window_params = [{transform_indices = @transform_0, window_bounds = array<i64: 1, 10, 10, 8>}, {pipeline_mode = #tpu.pipeline_mode<synchronous>, transform_indices = @transform_1, window_bounds = array<i64: 1, 72, 8>}, {transform_indices = @transform_2, window_bounds = array<i64: 1, 8, 8, 8>}, {transform_indices = @transform_3, window_bounds = array<i64: 1, 8, 8, 8>}]} {
    %c0 = arith.constant 0 : index
    %c0_0 = arith.constant 0 : index
    %c0_1 = arith.constant 0 : index
    %c0_2 = arith.constant 0 : index
    %0 = vector.load %arg1[%c0, %c0_0, %c0_1, %c0_2] : memref<1x10x10x8xbf16, #tpu.memory_space<vmem>>, vector<1x8x8x8xbf16>
    %1 = vector.shape_cast %0 : vector<1x8x8x8xbf16> to vector<8x8x8xbf16>
    %2 = vector.shape_cast %1 : vector<8x8x8xbf16> to vector<64x8xbf16>
    %c0_3 = arith.constant 0 : index
    %c0_4 = arith.constant 0 : index
    %c1 = arith.constant 1 : index
    %c0_5 = arith.constant 0 : index
    %3 = vector.load %arg1[%c0_3, %c0_4, %c1, %c0_5] : memref<1x10x10x8xbf16, #tpu.memory_space<vmem>>, vector<1x8x8x8xbf16>
    %4 = vector.shape_cast %3 : vector<1x8x8x8xbf16> to vector<8x8x8xbf16>
    %5 = vector.shape_cast %4 : vector<8x8x8xbf16> to vector<64x8xbf16>
    %c0_6 = arith.constant 0 : index
    %c0_7 = arith.constant 0 : index
    %c2 = arith.constant 2 : index
    %c0_8 = arith.constant 0 : index
    %6 = vector.load %arg1[%c0_6, %c0_7, %c2, %c0_8] : memref<1x10x10x8xbf16, #tpu.memory_space<vmem>>, vector<1x8x8x8xbf16>
    %7 = vector.shape_cast %6 : vector<1x8x8x8xbf16> to vector<8x8x8xbf16>
    %8 = vector.shape_cast %7 : vector<8x8x8xbf16> to vector<64x8xbf16>
    %c0_9 = arith.constant 0 : index
    %c1_10 = arith.constant 1 : index
    %c0_11 = arith.constant 0 : index
    %c0_12 = arith.constant 0 : index
    %9 = vector.load %arg1[%c0_9, %c1_10, %c0_11, %c0_12] : memref<1x10x10x8xbf16, #tpu.memory_space<vmem>>, vector<1x8x8x8xbf16>
    %10 = vector.shape_cast %9 : vector<1x8x8x8xbf16> to vector<8x8x8xbf16>
    %11 = vector.shape_cast %10 : vector<8x8x8xbf16> to vector<64x8xbf16>
    %c0_13 = arith.constant 0 : index
    %c1_14 = arith.constant 1 : index
    %c1_15 = arith.constant 1 : index
    %c0_16 = arith.constant 0 : index
    %12 = vector.load %arg1[%c0_13, %c1_14, %c1_15, %c0_16] : memref<1x10x10x8xbf16, #tpu.memory_space<vmem>>, vector<1x8x8x8xbf16>
    %13 = vector.shape_cast %12 : vector<1x8x8x8xbf16> to vector<8x8x8xbf16>
    %14 = vector.shape_cast %13 : vector<8x8x8xbf16> to vector<64x8xbf16>
    %c0_17 = arith.constant 0 : index
    %c1_18 = arith.constant 1 : index
    %c2_19 = arith.constant 2 : index
    %c0_20 = arith.constant 0 : index
    %15 = vector.load %arg1[%c0_17, %c1_18, %c2_19, %c0_20] : memref<1x10x10x8xbf16, #tpu.memory_space<vmem>>, vector<1x8x8x8xbf16>
    %16 = vector.shape_cast %15 : vector<1x8x8x8xbf16> to vector<8x8x8xbf16>
    %17 = vector.shape_cast %16 : vector<8x8x8xbf16> to vector<64x8xbf16>
    %c0_21 = arith.constant 0 : index
    %c2_22 = arith.constant 2 : index
    %c0_23 = arith.constant 0 : index
    %c0_24 = arith.constant 0 : index
    %18 = vector.load %arg1[%c0_21, %c2_22, %c0_23, %c0_24] : memref<1x10x10x8xbf16, #tpu.memory_space<vmem>>, vector<1x8x8x8xbf16>
    %19 = vector.shape_cast %18 : vector<1x8x8x8xbf16> to vector<8x8x8xbf16>
    %20 = vector.shape_cast %19 : vector<8x8x8xbf16> to vector<64x8xbf16>
    %c0_25 = arith.constant 0 : index
    %c2_26 = arith.constant 2 : index
    %c1_27 = arith.constant 1 : index
    %c0_28 = arith.constant 0 : index
    %21 = vector.load %arg1[%c0_25, %c2_26, %c1_27, %c0_28] : memref<1x10x10x8xbf16, #tpu.memory_space<vmem>>, vector<1x8x8x8xbf16>
    %22 = vector.shape_cast %21 : vector<1x8x8x8xbf16> to vector<8x8x8xbf16>
    %23 = vector.shape_cast %22 : vector<8x8x8xbf16> to vector<64x8xbf16>
    %c0_29 = arith.constant 0 : index
    %c2_30 = arith.constant 2 : index
    %c2_31 = arith.constant 2 : index
    %c0_32 = arith.constant 0 : index
    %24 = vector.load %arg1[%c0_29, %c2_30, %c2_31, %c0_32] : memref<1x10x10x8xbf16, #tpu.memory_space<vmem>>, vector<1x8x8x8xbf16>
    %25 = vector.shape_cast %24 : vector<1x8x8x8xbf16> to vector<8x8x8xbf16>
    %26 = vector.shape_cast %25 : vector<8x8x8xbf16> to vector<64x8xbf16>
    %27 = tpu.concatenate %2, %5, %8, %11, %14, %17, %20, %23, %26 in 1 : vector<64x8xbf16>, vector<64x8xbf16>, vector<64x8xbf16>, vector<64x8xbf16>, vector<64x8xbf16>, vector<64x8xbf16>, vector<64x8xbf16>, vector<64x8xbf16>, vector<64x8xbf16> -> vector<64x72xbf16>
    %c0_33 = arith.constant 0 : index
    %c0_34 = arith.constant 0 : index
    %c0_35 = arith.constant 0 : index
    %28 = vector.load %arg2[%c0_33, %c0_34, %c0_35] : memref<1x72x8xbf16, #tpu.memory_space<vmem>>, vector<1x72x8xbf16>
    %29 = vector.shape_cast %28 : vector<1x72x8xbf16> to vector<72x8xbf16>
    %cst = arith.constant dense<0.000000e+00> : vector<64x8xf32>
    %30 = tpu.matmul %27, %29, %cst {dimension_numbers = #tpu.dot_dimension_numbers<[1], [0], [0], [1], [0, 0, 1, 1], [], []>} : vector<64x72xbf16>, vector<72x8xbf16>, vector<64x8xf32> -> vector<64x8xf32>
    %31 = vector.shape_cast %30 : vector<64x8xf32> to vector<1x64x8xf32>
    %cst_36 = arith.constant dense<0.000000e+00> : vector<1xf32>
    %32 = vector.multi_reduction <add>, %31, %cst_36 [1, 2] : vector<1x64x8xf32> to vector<1xf32>
    %33 = vector.shape_cast %32 : vector<1xf32> to vector<1x1x1xf32>
    %34 = vector.extract %33[0, 0, 0] : f32 from vector<1x1x1xf32>
    %cst_37 = arith.constant 0.001953125 : f32
    %35 = arith.mulf %34, %cst_37 : f32
    %36 = arith.mulf %30, %30 : vector<64x8xf32>
    %37 = vector.shape_cast %36 : vector<64x8xf32> to vector<1x64x8xf32>
    %cst_38 = arith.constant dense<0.000000e+00> : vector<1xf32>
    %38 = vector.multi_reduction <add>, %37, %cst_38 [1, 2] : vector<1x64x8xf32> to vector<1xf32>
    %39 = vector.shape_cast %38 : vector<1xf32> to vector<1x1x1xf32>
    %40 = vector.extract %39[0, 0, 0] : f32 from vector<1x1x1xf32>
    %cst_39 = arith.constant 0.001953125 : f32
    %41 = arith.mulf %40, %cst_39 : f32
    %42 = arith.mulf %35, %35 : f32
    %43 = arith.subf %41, %42 : f32
    %44 = vector.broadcast %35 : f32 to vector<64x8xf32>
    %45 = arith.subf %30, %44 : vector<64x8xf32>
    %cst_40 = arith.constant 0.000000e+00 : f32
    %46 = arith.maximumf %43, %cst_40 : f32
    %cst_41 = arith.constant 9.99999974E-6 : f32
    %47 = arith.addf %46, %cst_41 : f32
    %48 = math.rsqrt %47 : f32
    %49 = vector.broadcast %48 : f32 to vector<64x8xf32>
    %50 = arith.mulf %45, %49 : vector<64x8xf32>
    %c0_42 = arith.constant 0 : index
    %c0_43 = arith.constant 0 : index
    %c0_44 = arith.constant 0 : index
    %c0_45 = arith.constant 0 : index
    %51 = vector.load %arg3[%c0_42, %c0_43, %c0_44, %c0_45] : memref<1x8x8x8xbf16, #tpu.memory_space<vmem>>, vector<1x8x8x8xbf16>
    %52 = vector.shape_cast %51 : vector<1x8x8x8xbf16> to vector<8x8x8xbf16>
    %53 = vector.shape_cast %52 : vector<8x8x8xbf16> to vector<64x8xbf16>
    %54 = arith.extf %53 : vector<64x8xbf16> to vector<64x8xf32>
    %55 = arith.addf %50, %54 : vector<64x8xf32>
    %cst_46 = arith.constant 0.000000e+00 : f32
    %56 = vector.broadcast %cst_46 : f32 to vector<64x8xf32>
    %57 = arith.maximumf %55, %56 : vector<64x8xf32>
    %58 = vector.shape_cast %57 : vector<64x8xf32> to vector<8x8x8xf32>
    %c0_47 = arith.constant 0 : index
    %c0_48 = arith.constant 0 : index
    %c0_49 = arith.constant 0 : index
    %c0_50 = arith.constant 0 : index
    %59 = vector.load %arg4[%c0_47, %c0_48, %c0_49, %c0_50] : memref<1x8x8x8xf32, #tpu.memory_space<vmem>>, vector<1x8x8x8xf32>
    %60 = vector.shape_cast %59 : vector<1x8x8x8xf32> to vector<8x8x8xf32>
    %61 = vector.shape_cast %58 : vector<8x8x8xf32> to vector<1x8x8x8xf32>
    tpu.vector_store %arg4[%c0_47, %c0_48, %c0_49, %c0_50], %61 {strides = array<i32>} : memref<1x8x8x8xf32, #tpu.memory_space<vmem>>, vector<1x8x8x8xf32>,
    return
  }
  func.func @transform_0(%arg0: i32) -> (i32, i32, i32, i32) {
    %c0_i32 = arith.constant 0 : i32
    %c0_i32_0 = arith.constant 0 : i32
    %c0_i32_1 = arith.constant 0 : i32
    %c0_i32_2 = arith.constant 0 : i32
    return %arg0, %c0_i32, %c0_i32_0, %c0_i32_1 : i32, i32, i32, i32
  }
  func.func @transform_1(%arg0: i32) -> (i32, i32, i32) {
    %c0_i32 = arith.constant 0 : i32
    %c0_i32_0 = arith.constant 0 : i32
    %c0_i32_1 = arith.constant 0 : i32
    %c0_i32_2 = arith.constant 0 : i32
    return %c0_i32, %c0_i32_0, %c0_i32_1 : i32, i32, i32
  }
  func.func @transform_2(%arg0: i32) -> (i32, i32, i32, i32) {
    %c0_i32 = arith.constant 0 : i32
    %c0_i32_0 = arith.constant 0 : i32
    %c0_i32_1 = arith.constant 0 : i32
    %c0_i32_2 = arith.constant 0 : i32
    return %arg0, %c0_i32, %c0_i32_0, %c0_i32_1 : i32, i32, i32, i32
  }
  func.func @transform_3(%arg0: i32) -> (i32, i32, i32, i32) {
    %c0_i32 = arith.constant 0 : i32
    %c0_i32_0 = arith.constant 0 : i32
    %c0_i32_1 = arith.constant 0 : i32
    %c0_i32_2 = arith.constant 0 : i32
    return %arg0, %c0_i32, %c0_i32_0, %c0_i32_1 : i32, i32, i32, i32
  }
}

module attributes {stable_mosaic.version = 11 : i64} {
  func.func @_conv1_kernel(%arg0: i32, %arg1: memref<1x4x9x9x4xbf16, #tpu.memory_space<vmem>>, %arg2: memref<1x36x8xbf16, #tpu.memory_space<vmem>>, %arg3: memref<1x4x8xbf16, #tpu.memory_space<vmem>>, %arg4: memref<1x10x10x8xbf16, #tpu.memory_space<vmem>>, %arg5: memref<1x8x8x8xbf16, #tpu.memory_space<vmem>>) attributes {dimension_semantics = [#tpu.dimension_semantics<parallel>], iteration_bounds = array<i64: 2>, scalar_prefetch = 0 : i64, scratch_operands = 0 : i64, tpu.core_type = #tpu.core_type<tc>, window_params = [{transform_indices = @transform_0, window_bounds = array<i64: 1, 4, 9, 9, 4>}, {pipeline_mode = #tpu.pipeline_mode<synchronous>, transform_indices = @transform_1, window_bounds = array<i64: 1, 36, 8>}, {pipeline_mode = #tpu.pipeline_mode<synchronous>, transform_indices = @transform_2, window_bounds = array<i64: 1, 4, 8>}, {transform_indices = @transform_3, window_bounds = array<i64: 1, 10, 10, 8>}, {transform_indices = @transform_4, window_bounds = array<i64: 1, 8, 8, 8>}]} {
    %c0 = arith.constant 0 : index
    %c0_0 = arith.constant 0 : index
    %c0_1 = arith.constant 0 : index
    %c0_2 = arith.constant 0 : index
    %c0_3 = arith.constant 0 : index
    %0 = vector.load %arg1[%c0, %c0_0, %c0_1, %c0_2, %c0_3] : memref<1x4x9x9x4xbf16, #tpu.memory_space<vmem>>, vector<1x1x8x8x4xbf16>
    %1 = vector.shape_cast %0 : vector<1x1x8x8x4xbf16> to vector<8x8x4xbf16>
    %2 = vector.shape_cast %1 : vector<8x8x4xbf16> to vector<64x4xbf16>
    %c0_4 = arith.constant 0 : index
    %c1 = arith.constant 1 : index
    %c0_5 = arith.constant 0 : index
    %c0_6 = arith.constant 0 : index
    %c0_7 = arith.constant 0 : index
    %3 = vector.load %arg1[%c0_4, %c1, %c0_5, %c0_6, %c0_7] : memref<1x4x9x9x4xbf16, #tpu.memory_space<vmem>>, vector<1x1x8x8x4xbf16>
    %4 = vector.shape_cast %3 : vector<1x1x8x8x4xbf16> to vector<8x8x4xbf16>
    %5 = vector.shape_cast %4 : vector<8x8x4xbf16> to vector<64x4xbf16>
    %c0_8 = arith.constant 0 : index
    %c0_9 = arith.constant 0 : index
    %c0_10 = arith.constant 0 : index
    %c1_11 = arith.constant 1 : index
    %c0_12 = arith.constant 0 : index
    %6 = vector.load %arg1[%c0_8, %c0_9, %c0_10, %c1_11, %c0_12] : memref<1x4x9x9x4xbf16, #tpu.memory_space<vmem>>, vector<1x1x8x8x4xbf16>
    %7 = vector.shape_cast %6 : vector<1x1x8x8x4xbf16> to vector<8x8x4xbf16>
    %8 = vector.shape_cast %7 : vector<8x8x4xbf16> to vector<64x4xbf16>
    %c0_13 = arith.constant 0 : index
    %c2 = arith.constant 2 : index
    %c0_14 = arith.constant 0 : index
    %c0_15 = arith.constant 0 : index
    %c0_16 = arith.constant 0 : index
    %9 = vector.load %arg1[%c0_13, %c2, %c0_14, %c0_15, %c0_16] : memref<1x4x9x9x4xbf16, #tpu.memory_space<vmem>>, vector<1x1x8x8x4xbf16>
    %10 = vector.shape_cast %9 : vector<1x1x8x8x4xbf16> to vector<8x8x4xbf16>
    %11 = vector.shape_cast %10 : vector<8x8x4xbf16> to vector<64x4xbf16>
    %c0_17 = arith.constant 0 : index
    %c3 = arith.constant 3 : index
    %c0_18 = arith.constant 0 : index
    %c0_19 = arith.constant 0 : index
    %c0_20 = arith.constant 0 : index
    %12 = vector.load %arg1[%c0_17, %c3, %c0_18, %c0_19, %c0_20] : memref<1x4x9x9x4xbf16, #tpu.memory_space<vmem>>, vector<1x1x8x8x4xbf16>
    %13 = vector.shape_cast %12 : vector<1x1x8x8x4xbf16> to vector<8x8x4xbf16>
    %14 = vector.shape_cast %13 : vector<8x8x4xbf16> to vector<64x4xbf16>
    %c0_21 = arith.constant 0 : index
    %c2_22 = arith.constant 2 : index
    %c0_23 = arith.constant 0 : index
    %c1_24 = arith.constant 1 : index
    %c0_25 = arith.constant 0 : index
    %15 = vector.load %arg1[%c0_21, %c2_22, %c0_23, %c1_24, %c0_25] : memref<1x4x9x9x4xbf16, #tpu.memory_space<vmem>>, vector<1x1x8x8x4xbf16>
    %16 = vector.shape_cast %15 : vector<1x1x8x8x4xbf16> to vector<8x8x4xbf16>
    %17 = vector.shape_cast %16 : vector<8x8x4xbf16> to vector<64x4xbf16>
    %c0_26 = arith.constant 0 : index
    %c0_27 = arith.constant 0 : index
    %c1_28 = arith.constant 1 : index
    %c0_29 = arith.constant 0 : index
    %c0_30 = arith.constant 0 : index
    %18 = vector.load %arg1[%c0_26, %c0_27, %c1_28, %c0_29, %c0_30] : memref<1x4x9x9x4xbf16, #tpu.memory_space<vmem>>, vector<1x1x8x8x4xbf16>
    %19 = vector.shape_cast %18 : vector<1x1x8x8x4xbf16> to vector<8x8x4xbf16>
    %20 = vector.shape_cast %19 : vector<8x8x4xbf16> to vector<64x4xbf16>
    %c0_31 = arith.constant 0 : index
    %c1_32 = arith.constant 1 : index
    %c1_33 = arith.constant 1 : index
    %c0_34 = arith.constant 0 : index
    %c0_35 = arith.constant 0 : index
    %21 = vector.load %arg1[%c0_31, %c1_32, %c1_33, %c0_34, %c0_35] : memref<1x4x9x9x4xbf16, #tpu.memory_space<vmem>>, vector<1x1x8x8x4xbf16>
    %22 = vector.shape_cast %21 : vector<1x1x8x8x4xbf16> to vector<8x8x4xbf16>
    %23 = vector.shape_cast %22 : vector<8x8x4xbf16> to vector<64x4xbf16>
    %c0_36 = arith.constant 0 : index
    %c0_37 = arith.constant 0 : index
    %c1_38 = arith.constant 1 : index
    %c1_39 = arith.constant 1 : index
    %c0_40 = arith.constant 0 : index
    %24 = vector.load %arg1[%c0_36, %c0_37, %c1_38, %c1_39, %c0_40] : memref<1x4x9x9x4xbf16, #tpu.memory_space<vmem>>, vector<1x1x8x8x4xbf16>
    %25 = vector.shape_cast %24 : vector<1x1x8x8x4xbf16> to vector<8x8x4xbf16>
    %26 = vector.shape_cast %25 : vector<8x8x4xbf16> to vector<64x4xbf16>
    %27 = tpu.concatenate %2, %5, %8, %11, %14, %17, %20, %23, %26 in 1 : vector<64x4xbf16>, vector<64x4xbf16>, vector<64x4xbf16>, vector<64x4xbf16>, vector<64x4xbf16>, vector<64x4xbf16>, vector<64x4xbf16>, vector<64x4xbf16>, vector<64x4xbf16> -> vector<64x36xbf16>
    %c0_41 = arith.constant 0 : index
    %c0_42 = arith.constant 0 : index
    %c0_43 = arith.constant 0 : index
    %28 = vector.load %arg2[%c0_41, %c0_42, %c0_43] : memref<1x36x8xbf16, #tpu.memory_space<vmem>>, vector<1x36x8xbf16>
    %29 = vector.shape_cast %28 : vector<1x36x8xbf16> to vector<36x8xbf16>
    %cst = arith.constant dense<0.000000e+00> : vector<64x8xf32>
    %30 = tpu.matmul %27, %29, %cst {dimension_numbers = #tpu.dot_dimension_numbers<[1], [0], [0], [1], [0, 0, 1, 1], [], []>} : vector<64x36xbf16>, vector<36x8xbf16>, vector<64x8xf32> -> vector<64x8xf32>
    %31 = vector.shape_cast %30 : vector<64x8xf32> to vector<1x64x8xf32>
    %cst_44 = arith.constant dense<0.000000e+00> : vector<1xf32>
    %32 = vector.multi_reduction <add>, %31, %cst_44 [1, 2] : vector<1x64x8xf32> to vector<1xf32>
    %33 = vector.shape_cast %32 : vector<1xf32> to vector<1x1x1xf32>
    %34 = vector.extract %33[0, 0, 0] : f32 from vector<1x1x1xf32>
    %cst_45 = arith.constant 0.001953125 : f32
    %35 = arith.mulf %34, %cst_45 : f32
    %36 = arith.mulf %30, %30 : vector<64x8xf32>
    %37 = vector.shape_cast %36 : vector<64x8xf32> to vector<1x64x8xf32>
    %cst_46 = arith.constant dense<0.000000e+00> : vector<1xf32>
    %38 = vector.multi_reduction <add>, %37, %cst_46 [1, 2] : vector<1x64x8xf32> to vector<1xf32>
    %39 = vector.shape_cast %38 : vector<1xf32> to vector<1x1x1xf32>
    %40 = vector.extract %39[0, 0, 0] : f32 from vector<1x1x1xf32>
    %cst_47 = arith.constant 0.001953125 : f32
    %41 = arith.mulf %40, %cst_47 : f32
    %42 = arith.mulf %35, %35 : f32
    %43 = arith.subf %41, %42 : f32
    %44 = vector.broadcast %35 : f32 to vector<64x8xf32>
    %45 = arith.subf %30, %44 : vector<64x8xf32>
    %cst_48 = arith.constant 0.000000e+00 : f32
    %46 = arith.maximumf %43, %cst_48 : f32
    %cst_49 = arith.constant 9.99999974E-6 : f32
    %47 = arith.addf %46, %cst_49 : f32
    %48 = math.rsqrt %47 : f32
    %49 = vector.broadcast %48 : f32 to vector<64x8xf32>
    %50 = arith.mulf %45, %49 : vector<64x8xf32>
    %cst_50 = arith.constant 0.000000e+00 : f32
    %51 = vector.broadcast %cst_50 : f32 to vector<64x8xf32>
    %52 = arith.maximumf %50, %51 : vector<64x8xf32>
    %cst_51 = arith.constant 0.000000e+00 : bf16
    %53 = vector.broadcast %cst_51 : bf16 to vector<10x10x8xbf16>
    %c0_52 = arith.constant 0 : index
    %c0_53 = arith.constant 0 : index
    %c0_54 = arith.constant 0 : index
    %c0_55 = arith.constant 0 : index
    %54 = vector.load %arg4[%c0_52, %c0_53, %c0_54, %c0_55] : memref<1x10x10x8xbf16, #tpu.memory_space<vmem>>, vector<1x10x10x8xbf16>
    %55 = vector.shape_cast %54 : vector<1x10x10x8xbf16> to vector<10x10x8xbf16>
    %56 = vector.shape_cast %53 : vector<10x10x8xbf16> to vector<1x10x10x8xbf16>
    tpu.vector_store %arg4[%c0_52, %c0_53, %c0_54, %c0_55], %56 {strides = array<i32>} : memref<1x10x10x8xbf16, #tpu.memory_space<vmem>>, vector<1x10x10x8xbf16>,
    %57 = vector.shape_cast %52 : vector<64x8xf32> to vector<8x8x8xf32>
    %58 = arith.truncf %57 : vector<8x8x8xf32> to vector<8x8x8xbf16>
    %c0_56 = arith.constant 0 : index
    %c1_57 = arith.constant 1 : index
    %c1_58 = arith.constant 1 : index
    %c0_59 = arith.constant 0 : index
    %59 = vector.load %arg4[%c0_56, %c1_57, %c1_58, %c0_59] : memref<1x10x10x8xbf16, #tpu.memory_space<vmem>>, vector<1x8x8x8xbf16>
    %60 = vector.shape_cast %59 : vector<1x8x8x8xbf16> to vector<8x8x8xbf16>
    %61 = vector.shape_cast %58 : vector<8x8x8xbf16> to vector<1x8x8x8xbf16>
    tpu.vector_store %arg4[%c0_56, %c1_57, %c1_58, %c0_59], %61 {strides = array<i32>} : memref<1x10x10x8xbf16, #tpu.memory_space<vmem>>, vector<1x8x8x8xbf16>,
    %c0_60 = arith.constant 0 : index
    %c3_61 = arith.constant 3 : index
    %c0_62 = arith.constant 0 : index
    %c0_63 = arith.constant 0 : index
    %c0_64 = arith.constant 0 : index
    %62 = vector.load %arg1[%c0_60, %c3_61, %c0_62, %c0_63, %c0_64] : memref<1x4x9x9x4xbf16, #tpu.memory_space<vmem>>, vector<1x1x8x8x4xbf16>
    %63 = vector.shape_cast %62 : vector<1x1x8x8x4xbf16> to vector<8x8x4xbf16>
    %64 = vector.shape_cast %63 : vector<8x8x4xbf16> to vector<64x4xbf16>
    %c0_65 = arith.constant 0 : index
    %c0_66 = arith.constant 0 : index
    %c0_67 = arith.constant 0 : index
    %65 = vector.load %arg3[%c0_65, %c0_66, %c0_67] : memref<1x4x8xbf16, #tpu.memory_space<vmem>>, vector<1x4x8xbf16>
    %66 = vector.shape_cast %65 : vector<1x4x8xbf16> to vector<4x8xbf16>
    %cst_68 = arith.constant dense<0.000000e+00> : vector<64x8xf32>
    %67 = tpu.matmul %64, %66, %cst_68 {dimension_numbers = #tpu.dot_dimension_numbers<[1], [0], [0], [1], [0, 0, 1, 1], [], []>} : vector<64x4xbf16>, vector<4x8xbf16>, vector<64x8xf32> -> vector<64x8xf32>
    %68 = vector.shape_cast %67 : vector<64x8xf32> to vector<1x64x8xf32>
    %cst_69 = arith.constant dense<0.000000e+00> : vector<1xf32>
    %69 = vector.multi_reduction <add>, %68, %cst_69 [1, 2] : vector<1x64x8xf32> to vector<1xf32>
    %70 = vector.shape_cast %69 : vector<1xf32> to vector<1x1x1xf32>
    %71 = vector.extract %70[0, 0, 0] : f32 from vector<1x1x1xf32>
    %cst_70 = arith.constant 0.001953125 : f32
    %72 = arith.mulf %71, %cst_70 : f32
    %73 = arith.mulf %67, %67 : vector<64x8xf32>
    %74 = vector.shape_cast %73 : vector<64x8xf32> to vector<1x64x8xf32>
    %cst_71 = arith.constant dense<0.000000e+00> : vector<1xf32>
    %75 = vector.multi_reduction <add>, %74, %cst_71 [1, 2] : vector<1x64x8xf32> to vector<1xf32>
    %76 = vector.shape_cast %75 : vector<1xf32> to vector<1x1x1xf32>
    %77 = vector.extract %76[0, 0, 0] : f32 from vector<1x1x1xf32>
    %cst_72 = arith.constant 0.001953125 : f32
    %78 = arith.mulf %77, %cst_72 : f32
    %79 = arith.mulf %72, %72 : f32
    %80 = arith.subf %78, %79 : f32
    %81 = vector.broadcast %72 : f32 to vector<64x8xf32>
    %82 = arith.subf %67, %81 : vector<64x8xf32>
    %cst_73 = arith.constant 0.000000e+00 : f32
    %83 = arith.maximumf %80, %cst_73 : f32
    %cst_74 = arith.constant 9.99999974E-6 : f32
    %84 = arith.addf %83, %cst_74 : f32
    %85 = math.rsqrt %84 : f32
    %86 = vector.broadcast %85 : f32 to vector<64x8xf32>
    %87 = arith.mulf %82, %86 : vector<64x8xf32>
    %88 = vector.shape_cast %87 : vector<64x8xf32> to vector<8x8x8xf32>
    %89 = arith.truncf %88 : vector<8x8x8xf32> to vector<8x8x8xbf16>
    %c0_75 = arith.constant 0 : index
    %c0_76 = arith.constant 0 : index
    %c0_77 = arith.constant 0 : index
    %c0_78 = arith.constant 0 : index
    %90 = vector.load %arg5[%c0_75, %c0_76, %c0_77, %c0_78] : memref<1x8x8x8xbf16, #tpu.memory_space<vmem>>, vector<1x8x8x8xbf16>
    %91 = vector.shape_cast %90 : vector<1x8x8x8xbf16> to vector<8x8x8xbf16>
    %92 = vector.shape_cast %89 : vector<8x8x8xbf16> to vector<1x8x8x8xbf16>
    tpu.vector_store %arg5[%c0_75, %c0_76, %c0_77, %c0_78], %92 {strides = array<i32>} : memref<1x8x8x8xbf16, #tpu.memory_space<vmem>>, vector<1x8x8x8xbf16>,
    return
  }
  func.func @transform_0(%arg0: i32) -> (i32, i32, i32, i32, i32) {
    %c0_i32 = arith.constant 0 : i32
    %c0_i32_0 = arith.constant 0 : i32
    %c0_i32_1 = arith.constant 0 : i32
    %c0_i32_2 = arith.constant 0 : i32
    %c0_i32_3 = arith.constant 0 : i32
    return %arg0, %c0_i32, %c0_i32_0, %c0_i32_1, %c0_i32_2 : i32, i32, i32, i32, i32
  }
  func.func @transform_1(%arg0: i32) -> (i32, i32, i32) {
    %c0_i32 = arith.constant 0 : i32
    %c0_i32_0 = arith.constant 0 : i32
    %c0_i32_1 = arith.constant 0 : i32
    %c0_i32_2 = arith.constant 0 : i32
    return %c0_i32, %c0_i32_0, %c0_i32_1 : i32, i32, i32
  }
  func.func @transform_2(%arg0: i32) -> (i32, i32, i32) {
    %c0_i32 = arith.constant 0 : i32
    %c0_i32_0 = arith.constant 0 : i32
    %c0_i32_1 = arith.constant 0 : i32
    %c0_i32_2 = arith.constant 0 : i32
    return %c0_i32, %c0_i32_0, %c0_i32_1 : i32, i32, i32
  }
  func.func @transform_3(%arg0: i32) -> (i32, i32, i32, i32) {
    %c0_i32 = arith.constant 0 : i32
    %c0_i32_0 = arith.constant 0 : i32
    %c0_i32_1 = arith.constant 0 : i32
    %c0_i32_2 = arith.constant 0 : i32
    return %arg0, %c0_i32, %c0_i32_0, %c0_i32_1 : i32, i32, i32, i32
  }
  func.func @transform_4(%arg0: i32) -> (i32, i32, i32, i32) {
    %c0_i32 = arith.constant 0 : i32
    %c0_i32_0 = arith.constant 0 : i32
    %c0_i32_1 = arith.constant 0 : i32
    %c0_i32_2 = arith.constant 0 : i32
    return %arg0, %c0_i32, %c0_i32_0, %c0_i32_1 : i32, i32, i32, i32
  }
}

</mosaic_0001>

<bundles_post_ra>
// kernel: basic_block_forward.3
= control target key start
LH: loop header
LB: loop body
LE: loop exit
PB: predicated region body
PF: predicated region fallthrough
CT: control target
= control target key end

     0   :  { %s1597_s12 = smov 0   ;;  %s2095_s0 = inlined_call_operand.vmem [shape: bf16[2,10,10,8], index: 0, kind: input, shape index: {}]   ;;  %s2096_s1 = inlined_call_operand.vmem [shape: bf16[1,72,8], index: 1, kind: input, shape index: {}]   ;;  %s2097_s2 = inlined_call_operand.vmem [shape: bf16[2,8,8,8], index: 2, kind: input, shape index: {}]   ;;  %s2098_s3 = inlined_call_operand.vmem [shape: f32[2,8,8,8], index: 3, kind: output, shape index: {}]  }
   0x1 LB: > { %s1328_s13 = sadd.s32 4294967295, %s1566_s12   ;;  %p1332_p0 = scmp.ge.s32.totalorder %s1566_s12, 1  ;;  %s1566_s12 = sphi %s1597_s12, %s13_s12  }
   0x2   : > { %p147_p1 = scmp.lt.s32.totalorder %s1566_s12, 3 }
   0x4   : > { %p148_p2 = pnand %p1332_p0, %p147_p1 }
   0x5   : > { %p176_p3 = scmp.lt.s32.totalorder (!%p148_p2), %s1328_s13, 1  ;;  %vm347_vm0 = vcmask (!%p148_p2), 1042432   ;;  %vm348_vm1 = vcmask (!%p148_p2), 1046532   ;;  %s1568_s18 = smov (!%p148_p2), 24   ;;  %vm208_vm3 = vsmask.f32 (!%p148_p2), 3328 }
   0x6   : > { %151 = sbr.rel (%p148_p2) target bundleno = 729 (0x2d9), region = 32  ;;  %vm1628_vm2 = vmor (!%p148_p2), %vm347_vm0, %vm348_vm1  ;;  %vm209_vm4 = vsmask.f32 (!%p148_p2), 7440  ;;  %s1569_s19 = smov (!%p148_p2), 16   ;;  %vm1069_vm6 = vcmask (!%p148_p2), 1043456   ;;  %vm948_vm7 = vcmask (!%p148_p2), 64512  }
   0x7   : > { %s1570_s20 = smov (!%p148_p2), 40   ;;  %vm1699_vm5 = vmor (!%p148_p2), %vm208_vm3, %vm209_vm4  ;;  %s1571_s23 = smov (!%p148_p2), 8   ;;  %vm961_vm8 = vcmask (!%p148_p2), 130048   ;;  %vm970_vm9 = vcmask (!%p148_p2), 195584   ;;  %vm979_vm10 = vcmask (!%p148_p2), 261120   ;;  %vm988_vm11 = vcmask (!%p148_p2), 326656  }
   0x8   : > { %s1572_s28 = smov (!%p148_p2), 32   ;;  %s1573_s4 = smov (!%p148_p2), 48   ;;  %vm997_vm12 = vcmask (!%p148_p2), 392192   ;;  %vm1006_vm13 = vcmask (!%p148_p2), 457728   ;;  %vm1015_vm14 = vcmask (!%p148_p2), 523264   ;;  %vm1060_vm15 = vcmask (!%p148_p2), 588800  }
   0x9   : > { %s1574_s5 = smov (!%p148_p2), 56   ;;  %s1575_s6 = smov (!%p148_p2), 64  }
   0xd   : > { %s2104_s13 = smov (!%p176_p3, %s1328_s13), 1 }
   0xe   : > { %s1517_s14 = smul.u32 80, %s2104_s13  ;;  %s1458_s25 = sshll.u32 %s2104_s13, 6 }
  0x10   : > { %s1611_s17 = scalar_lea.vmem %s2095_s0, %s1517_s14 }
  0x11   : > { %v1348_v0 = vld [vmem:[%s1611_s17 + $0x18] sm:$0xf]  ;;  %v1349_v1 = vld [vmem:[%s1611_s17 + $0x20] sm:$0xf]  ;;  %v1346_v2 = vld [vmem:[%s1611_s17 + $0x8] sm:$0xf] }
  0x12   : > { %v442_v3 = vshrl.u32 %v1349_v1, 16  ;;  %v445_v4 = vshll.u32 %v1349_v1, 16  ;;  %v1423_v5 = vcombine.low %v1348_v0, %v1349_v1  ;;  %v428_v6 = vshrl.u32 %v1348_v0, 16  ;;  %v1347_v7 = vld [vmem:[%s1611_s17 + $0x10] sm:$0xf] }
  0x13   : > { %v431_v8 = vshll.u32 %v1348_v0, 16  ;;  %v414_v9 = vshrl.u32 %v1347_v7, 16  ;;  %v417_v10 = vshll.u32 %v1347_v7, 16  ;;  %v1422_v11 = vcombine.low %v1346_v2, %v1347_v7  ;;  %v1618_v12 = vld [vmem:[%s1611_s17 + $0x4] sm:$0x1] }
  0x14   : > { %v444_v13 = vrot.slane %v442_v3, 4  ;;  %v447_v14 = vrot.slane %v445_v4, 5  ;;  %834 = vrot.lane.b32.xlu1 %v1423_v5, %s1568_s18  ;;  %v430_v15 = vrot.slane %v428_v6, 4  ;;  %v400_v16 = vshrl.u32 %v1346_v2, 16  ;;  %v1622_v17 = vld [vmem:[%s1611_s17 + $0xc] sm:$0x1] }
  0x15   : > { %v433_v18 = vrot.slane %v431_v8, 5  ;;  %v416_v19 = vrot.slane %v414_v9, 4  ;;  %v419_v20 = vrot.slane %v417_v10, 5  ;;  %832 = vrot.lane.b32.xlu0 %v1422_v11, %s1568_s18  ;;  %v403_v21 = vshll.u32 %v1346_v2, 16  ;;  %v323_v22 = vld [vmem:[%s1611_s17] sm:$0xe] }
  0x16   : > { %v448_v24 = vor.u32 %v447_v14, %v444_v13  ;;  %v402_v25 = vrot.slane %v400_v16, 4  ;;  %v324_v26 = vld [vmem:[%s1611_s17 + $0x8] sm:$0xe]  ;;  %v1338_v27 = vrot.slane %v323_v22, 9  ;;  %v352_v28 = vrot.slane %v1618_v12, 5 }
  0x17   : > { %v434_v29 = vor.u32 %v433_v18, %v430_v15  ;;  %v420_v30 = vor.u32 %v419_v20, %v416_v19  ;;  %v405_v31 = vrot.slane %v403_v21, 5  ;;  %v1339_v32 = vrot.slane %v324_v26, 9  ;;  %v1635_v33 = vld [vmem:[%s1611_s17 + $0xc] sm:$0x1]  ;;  %v1638_v34 = vld [vmem:[%s1611_s17 + $0x14] sm:$0x1] }
  0x18   : > { %v1640_v35 = vrot.slane %v448_v24, 4  ;;  %v353_v36 = vsel %vm1628_vm2, %v1338_v27, %v352_v28  ;;  %v356_v37 = vrot.slane %v1622_v17, 5  ;;  %v1362_v38 = vld [vmem:[%s1611_s17 + $0x8] sm:$0xe]  ;;  %v1363_v39 = vld [vmem:[%s1611_s17 + $0x10] sm:$0xe] }
  0x19   : > { %v1647_v40 = vrot.slane %v434_v29, 4  ;;  %v1649_v41 = vrot.slane %v420_v30, 4  ;;  %v406_v42 = vor.u32 %v405_v31, %v402_v25  ;;  %v1370_v43 = vrot.slane %v1362_v38, 9  ;;  %v1652_v44 = vld [vmem:[%s1611_s17 + $0x14] sm:$0x1] }
  0x1a   : > { %v357_v45 = vsel %vm1628_vm2, %v1339_v32, %v356_v37  ;;  %v537_v46 = vrot.slane %v1635_v33, 5  ;;  %v1371_v47 = vrot.slane %v1363_v39, 9  ;;  %v541_v48 = vrot.slane %v1638_v34, 5  ;;  %v1659_v49 = vld [vmem:[%s1611_s17 + $0x1c] sm:$0x1] }
  0x1b   : > { %v1661_v50 = vrot.slane %v406_v42, 4  ;;  %v1418_v51 = vcombine.low %v353_v36, %v357_v45  ;;  %v325_v52 = vld [vmem:[%s1611_s17 + $0x10] sm:$0xe]  ;;  %v326_v53 = vld [vmem:[%s1611_s17 + $0x18] sm:$0xe]  ;;  %v360_v54 = vrot.slane %v1652_v44, 5 }
  0x1c   : > { %v538_v55 = vsel %vm1628_vm2, %v1370_v43, %v537_v46  ;;  %v542_v56 = vsel %vm1628_vm2, %v1371_v47, %v541_v48  ;;  %v1340_v57 = vrot.slane %v325_v52, 9  ;;  %v1341_v58 = vrot.slane %v326_v53, 9  ;;  %v1671_v59 = vld [vmem:[%s1611_s17] sm:$0xf]  ;;  %v1674_v60 = vld [vmem:[%s1611_s17 + $0x8] sm:$0xf] }
  0x1d   : > { %804 = vrot.lane.b32.xlu1 %v1418_v51, %s1569_s19  ;;  %v1430_v61 = vcombine.low %v538_v55, %v542_v56  ;;  %v364_v62 = vrot.slane %v1659_v49, 5  ;;  %v212_v63 = vshrl.u32 %v1671_v59, 16  ;;  %v215_v0 = vshll.u32 %v1671_v59, 16  ;;  %v1356_v1 = vld [vmem:[%s1611_s17 + $0x1c] sm:$0x1]  ;;  %v1551_v53 = vld [vmem:[%s2096_s1] sm:$0xff]  }
  0x1e   : > { %v361_v2 = vsel %vm1628_vm2, %v1340_v57, %v360_v54  ;;  %v221_v3 = vshll.u32 %v1618_v12, 16  ;;  %v226_v4 = vshrl.u32 %v1674_v60, 16  ;;  %v229_v5 = vshll.u32 %v1674_v60, 16  ;;  %v1357_v6 = vld [vmem:[%s1611_s17 + $0x24] sm:$0x1]  ;;  %1487 = vmatprep.subr.bf16.mxu0 %v1551_v53  ;;  %1505 = vmatprep.subr.bf16.mxu1 %v1551_v53 }
  0x1f   : > { %872 = vrot.lane.b32.xlu0 %v1430_v61, %s1570_s20  ;;  %v365_v7 = vsel %vm1628_vm2, %v1341_v58, %v364_v62  ;;  %v214_v8 = vrot.slane %v212_v63, 4  ;;  %v217_v9 = vrot.slane %v215_v0, 5  ;;  %v235_v10 = vshll.u32 %v1622_v17, 16  ;;  %v1364_v11 = vld [vmem:[%s1611_s17 + $0x18] sm:$0xe]  ;;  %1488 = vmatpush3.bf16.msra.mxu0 %v1551_v53 }
  0x20   : > { %v1419_v13 = vcombine.low %v361_v2, %v365_v7  ;;  %v223_v12 = vrot.slane %v221_v3, 5  ;;  %v228_v14 = vrot.slane %v226_v4, 4  ;;  %v231_v15 = vrot.slane %v229_v5, 5  ;;  %v1365_v16 = vld [vmem:[%s1611_s17 + $0x20] sm:$0xe]  ;;  %1510 = vmatpush3.bf16.msra.mxu1 %v1551_v53 }
  0x21   : > { %v218_v18 = vor.u32 %v217_v9, %v214_v8  ;;  %v237_v19 = vrot.slane %v235_v10, 5  ;;  %v1372_v20 = vrot.slane %v1364_v11, 9  ;;  %v545_v21 = vrot.slane %v1356_v1, 5  ;;  %v1694_v22 = vld [vmem:[%s1611_s17 + $0x10] sm:$0xf] }
  0x22   : > { %806 = vrot.lane.b32.xlu1 %v1419_v13, %s1569_s19  ;;  %v232_v17 = vor.u32 %v231_v15, %v228_v14  ;;  %v1373_v25 = vrot.slane %v1365_v16, 9  ;;  %v549_v26 = vrot.slane %v1357_v6, 5  ;;  %v1704_v27 = vld [vmem:[%s1611_s17 + $0x18] sm:$0xf]  ;;  %v240_v28 = vshrl.u32 %v1694_v22, 16 }
  0x23   : > { %v219_v29 = vrot.slane %v218_v18, 4  ;;  %v546_v30 = vsel %vm1628_vm2, %v1372_v20, %v545_v21  ;;  %v243_v31 = vshll.u32 %v1694_v22, 16  ;;  %v249_v32 = vshll.u32 %v1652_v44, 16  ;;  %v1721_v52 = vld [vmem:[%s1611_s17 + $0x20] sm:$0xf] }
  0x24   : > { %v233_v36 = vrot.slane %v232_v17, 4  ;;  %v550_v37 = vsel %vm1628_vm2, %v1373_v25, %v549_v26  ;;  %v242_v38 = vrot.slane %v240_v28, 4  ;;  %v254_v39 = vshrl.u32 %v1704_v27, 16  ;;  %v1745_v11 = vld [vmem:[%s1611_s17 + $0x10] sm:$0xf] }
  0x25   : > { %v224_v42 = vsel %vm1699_vm5, %v219_v29, %v223_v12  ;;  %v1431_v43 = vcombine.low %v546_v30, %v550_v37  ;;  %v245_v45 = vrot.slane %v243_v31, 5  ;;  %v251_v46 = vrot.slane %v249_v32, 5  ;;  %v1754_v16 = vld [vmem:[%s1611_s17 + $0x18] sm:$0xf]  ;;  %v1766_v25 = vld [vmem:[%s1611_s17 + $0x24] sm:$0x1] }
  0x26   : > { %v238_v47 = vsel %vm1699_vm5, %v233_v36, %v237_v19  ;;  %v256_v48 = vrot.slane %v254_v39, 4  ;;  %v257_v51 = vshll.u32 %v1704_v27, 16  ;;  %v263_v44 = vshll.u32 %v1659_v49, 16  ;;  %v1769_v26 = vld [vmem:[%s1611_s17 + $0x2c] sm:$0x1] }
  0x27   : > { %v1414_v54 = vcombine.low %v224_v42, %v238_v47  ;;  %874 = vrot.lane.b32.xlu1 %v1431_v43, %s1570_s20  ;;  %v246_v55 = vor.u32 %v245_v45, %v242_v38  ;;  %v437_v56 = vshll.u32 %v1356_v1, 16  ;;  %v451_v57 = vshll.u32 %v1357_v6, 16  ;;  %v1381_v6 = vld [vmem:[%s1611_s17 + $0x28] sm:$0xf]  ;;  %v1773_v32 = vld [vmem:[%s1611_s17 + $0x14] sm:$0x1] }
  0x28   : > { %v259_v58 = vrot.slane %v257_v51, 5  ;;  %v265_v61 = vrot.slane %v263_v44, 5  ;;  %v409_v62 = vshll.u32 %v1635_v33, 16  ;;  %v423_v63 = vshll.u32 %v1638_v34, 16  ;;  %v1552_v34 = vld [vmem:[%s2096_s1 + $0x8] sm:$0xff]   ;;  %v1554_v43 = vld [vmem:[%s2096_s1 + $0x18] sm:$0xff]  }
  0x29   : > { %784 = vrot.lane.b32.xlu0 %v1414_v54, %s1571_s23  ;;  %v247_v49 = vrot.slane %v246_v55, 4  ;;  %v439_v0 = vrot.slane %v437_v56, 5  ;;  %v453_v2 = vrot.slane %v451_v57, 5  ;;  %v613_v3 = vshrl.u32 %v1721_v52, 16  ;;  %1489 = vmatprep.subr.bf16.mxu0 %v1552_v34  ;;  %v1779_v42 = vld [vmem:[%s1611_s17 + $0x1c] sm:$0x1] }
  0x2a   : > { %v260_v1 = vor.u32 %v259_v58, %v256_v48  ;;  %v411_v4 = vrot.slane %v409_v62, 5  ;;  %v425_v5 = vrot.slane %v423_v63, 5  ;;  %v616_v33 = vshll.u32 %v1721_v52, 16  ;;  %1506 = vmatprep.subr.bf16.mxu1 %v1552_v34  ;;  %1490 = vmatpush3.bf16.msra.mxu0 %v1552_v34  ;;  %v1790_v54 = vld [vmem:[%s1611_s17 + $0x20] sm:$0xf] }
  0x2b   : > { %v252_v7 = vsel %vm1699_vm5, %v247_v49, %v251_v46  ;;  %v440_v8 = vsel %vm1699_vm5, %v1647_v40, %v439_v0  ;;  %v454_v9 = vsel %vm1699_vm5, %v1640_v35, %v453_v2  ;;  %v615_v10 = vrot.slane %v613_v3, 4  ;;  %v1553_v35 = vld [vmem:[%s2096_s1 + $0x10] sm:$0xff]   ;;  %1511 = vmatpush3.bf16.msra.mxu1 %v1552_v34  ;;  %v1797_v2 = vld [vmem:[%s1611_s17 + $0x28] sm:$0xf]  ;;  %v1556_v24 = vld [vmem:[%s2096_s1 + $0x20] ss:$0 sps:$4 sm:$0xff]  }
  0x2c   : > { %v261_v13 = vrot.slane %v260_v1, 4  ;;  %v1427_v12 = vcombine.low %v440_v8, %v454_v9  ;;  %v412_v14 = vsel %vm1699_vm5, %v1661_v50, %v411_v4  ;;  %v426_v15 = vsel %vm1699_vm5, %v1649_v41, %v425_v5  ;;  %1491 = vmatprep.subr.bf16.mxu0 %v1553_v35  ;;  %1507 = vmatprep.subr.bf16.mxu1 %v1553_v35  ;;  %v1803_v4 = vld [vmem:[%s1611_s17 + $0x2c] sm:$0x1]  ;;  %v1394_v9 = vld [vmem:[%s1611_s17 + $0x10] sm:$0xe] }
  0x2d   : > { %v1426_v40 = vcombine.low %v412_v14, %v426_v15  ;;  %v618_v18 = vrot.slane %v616_v33, 5  ;;  %v627_v19 = vshrl.u32 %v1381_v6, 16  ;;  %v630_v20 = vshll.u32 %v1381_v6, 16  ;;  %v1395_v14 = vld [vmem:[%s1611_s17 + $0x18] sm:$0xe] }
  0x2e   : > { %v266_v50 = vsel %vm1699_vm5, %v261_v13, %v265_v61  ;;  %854 = vrot.lane.b32.xlu1 %v1427_v12, %s1572_s28  ;;  %v1435_v41 = vcombine.low %v1721_v52, %v1381_v6  ;;  %v585_v21 = vshrl.u32 %v1745_v11, 16  ;;  %v588_v17 = vshll.u32 %v1745_v11, 16  ;;  %1492 = vmatpush3.bf16.msra.mxu0 %v1553_v35  ;;  %v1794_v61 = vld [vmem:[%s1611_s17 + $0x24] sm:$0x1] }
  0x2f   : > { %v1415_v28 = vcombine.low %v252_v7, %v266_v50  ;;  %v629_v29 = vrot.slane %v627_v19, 4  ;;  %v632_v30 = vrot.slane %v630_v20, 5  ;;  %v599_v31 = vshrl.u32 %v1754_v16, 16  ;;  %1493 = vmatprep.subr.bf16.mxu0 %v1554_v43  ;;  %1512 = vmatpush3.bf16.msra.mxu1 %v1553_v35 }
  0x30   : > { %v587_v36 = vrot.slane %v585_v21, 4  ;;  %v590_v37 = vrot.slane %v588_v17, 5  ;;  %v602_v38 = vshll.u32 %v1754_v16, 16  ;;  %v1434_v39 = vcombine.low %v1745_v11, %v1754_v16  ;;  %1508 = vmatprep.subr.bf16.mxu1 %v1554_v43  ;;  %v1825_v21 = vld [vmem:[%s1611_s17 + $0x38] sm:$0xf] }
  0x31   : > { %786 = vrot.lane.b32.xlu0 %v1415_v28, %s1571_s23  ;;  %v601_v45 = vrot.slane %v599_v31, 4  ;;  %v619_v46 = vor.u32 %v618_v18, %v615_v10  ;;  %v622_v47 = vshll.u32 %v1766_v25, 16  ;;  %v633_v48 = vor.u32 %v632_v30, %v629_v29  ;;  %v1820_v18 = vld [vmem:[%s1611_s17 + $0x30] sm:$0xf]  ;;  %v206_v17 = vld [vmem:[%s1611_s17 + $0x34] sm:$0x1] }
  0x32   : > { %902 = vrot.lane.b32.xlu1 %v1435_v41, %s1573_s4  ;;  %v604_v51 = vrot.slane %v602_v38, 5  ;;  %v636_v44 = vshll.u32 %v1769_v26, 16  ;;  %v591_v52 = vor.u32 %v590_v37, %v587_v36  ;;  %v594_v53 = vshll.u32 %v1773_v32, 16  ;;  %1494 = vmatpush3.bf16.msra.mxu0 %v1554_v43 }
  0x33   : > { %v620_v55 = vrot.slane %v619_v46, 4  ;;  %v624_v56 = vrot.slane %v622_v47, 5  ;;  %v634_v57 = vrot.slane %v633_v48, 4  ;;  %v608_v58 = vshll.u32 %v1779_v42, 16  ;;  %1513 = vmatpush3.bf16.msra.mxu1 %v1554_v43  ;;  %v207_v46 = vld [vmem:[%s1611_s17 + $0x3c] sm:$0x1]  ;;  %1515 = vmatprep.subr.msk.bf16.mxu0 %vm1069_vm6, %v1556_v24 }
  0x34   : > { %v638_v62 = vrot.slane %v636_v44, 5  ;;  %v592_v63 = vrot.slane %v591_v52, 4  ;;  %v596_v49 = vrot.slane %v594_v53, 5  ;;  %v605_v0 = vor.u32 %v604_v51, %v601_v45  ;;  %v1396_v51 = vld [vmem:[%s1611_s17 + $0x20] sm:$0xe]  ;;  %1516 = vmatprep.subr.msk.bf16.mxu1 %vm1069_vm6, %v1556_v24 }
  0x35   : > { %852 = vrot.lane.b32.xlu0 %v1426_v40, %s1572_s28  ;;  %v625_v3 = vsel %vm1699_vm5, %v620_v55, %v624_v56  ;;  %v610_v1 = vrot.slane %v608_v58, 5  ;;  %v268_v5 = vshrl.u32 %v1790_v54, 16  ;;  %v271_v6 = vshll.u32 %v1790_v54, 16  ;;  %v1397_v53 = vld [vmem:[%s1611_s17 + $0x28] sm:$0xe] }
  0x36   : > { %v639_v33 = vsel %vm1699_vm5, %v634_v57, %v638_v62  ;;  %v597_v34 = vsel %vm1699_vm5, %v592_v63, %v596_v49  ;;  %v606_v7 = vrot.slane %v605_v0, 4  ;;  %v277_v8 = vshll.u32 %v1794_v61, 16 }
  0x37   : > { %v1439_v10 = vcombine.low %v625_v3, %v639_v33  ;;  %v270_v11 = vrot.slane %v268_v5, 4  ;;  %v273_v13 = vrot.slane %v271_v6, 5  ;;  %v282_v12 = vshrl.u32 %v1797_v2, 16  ;;  %v329_v3 = vld [vmem:[%s1611_s17 + $0x30] sm:$0xe] }
  0x38   : > { %v611_v15 = vsel %vm1699_vm5, %v606_v7, %v610_v1  ;;  %v279_v16 = vrot.slane %v277_v8, 5  ;;  %v285_v35 = vshll.u32 %v1797_v2, 16  ;;  %v291_v40 = vshll.u32 %v1803_v4, 16 }
  0x39   : > { %900 = vrot.lane.b32.xlu0 %v1434_v39, %s1573_s4  ;;  %922 = vrot.lane.b32.xlu1 %v1439_v10, %s1574_s5  ;;  %v1438_v19 = vcombine.low %v597_v34, %v611_v15  ;;  %v274_v20 = vor.u32 %v273_v13, %v270_v11  ;;  %v284_v50 = vrot.slane %v282_v12, 4  ;;  %v1402_v41 = vrot.slane %v1394_v9, 9  ;;  %v330_v34 = vld [vmem:[%s1611_s17 + $0x38] sm:$0xe]  ;;  %v327_v11 = vld [vmem:[%s1611_s17 + $0x20] sm:$0xe] }
  0x3a   : > { %v287_v28 = vrot.slane %v285_v35, 5  ;;  %v293_v29 = vrot.slane %v291_v40, 5  ;;  %v722_v30 = vrot.slane %v1773_v32, 5  ;;  %v1403_v31 = vrot.slane %v1395_v14, 9  ;;  %v328_v15 = vld [vmem:[%s1611_s17 + $0x28] sm:$0xe] }
  0x3b   : > { %v275_v36 = vrot.slane %v274_v20, 4  ;;  %v726_v37 = vrot.slane %v1779_v42, 5  ;;  %v296_v38 = vshrl.u32 %v1820_v18, 16  ;;  %v299_v39 = vshll.u32 %v1820_v18, 16  ;;  %v1864_v20 = vld [vmem:[%s1611_s17 + $0x40] sm:$0xf] }
  0x3c   : > { %v288_v43 = vor.u32 %v287_v28, %v284_v50  ;;  %v723_v45 = vsel %vm1628_vm2, %v1402_v41, %v722_v30  ;;  %v305_v47 = vshll.u32 %v206_v17, 16  ;;  %v310_v48 = vshrl.u32 %v1825_v21, 16 }
  0x3d   : > { %920 = vrot.lane.b32.xlu0 %v1438_v19, %s1574_s5  ;;  %v280_v32 = vsel %vm1699_vm5, %v275_v36, %v279_v16  ;;  %v727_v42 = vsel %vm1628_vm2, %v1403_v31, %v726_v37  ;;  %v298_v44 = vrot.slane %v296_v38, 4  ;;  %v301_v52 = vrot.slane %v299_v39, 5 }
  0x3e   : > { %v289_v55 = vrot.slane %v288_v43, 4  ;;  %v1442_v56 = vcombine.low %v723_v45, %v727_v42  ;;  %v307_v57 = vrot.slane %v305_v47, 5  ;;  %v312_v58 = vrot.slane %v310_v48, 4  ;;  %v1351_v48 = vld [vmem:[%s1611_s17 + $0x30] sm:$0xf] }
  0x3f   : > { %v302_v62 = vor.u32 %v301_v52, %v298_v44  ;;  %v313_v63 = vshll.u32 %v1825_v21, 16  ;;  %v319_v49 = vshll.u32 %v207_v46, 16  ;;  %v1404_v0 = vrot.slane %v1396_v51, 9  ;;  %v1360_v52 = vld [vmem:[%s1611_s17 + $0x3c] sm:$0x1] }
  0x40   : > { %v294_v1 = vsel %vm1699_vm5, %v289_v55, %v293_v29  ;;  %v730_v5 = vrot.slane %v1766_v25, 5  ;;  %v1405_v6 = vrot.slane %v1397_v53, 9  ;;  %v734_v33 = vrot.slane %v1769_v26, 5  ;;  %v1858_v26 = vld [vmem:[%s1611_s17 + $0x38] sm:$0xf] }
  0x41   : > { %v1416_v7 = vcombine.low %v280_v32, %v294_v1  ;;  %940 = vrot.lane.b32.xlu0 %v1442_v56, %s1575_s6  ;;  %v303_v8 = vrot.slane %v302_v62, 4  ;;  %v315_v9 = vrot.slane %v313_v63, 5  ;;  %v321_v10 = vrot.slane %v319_v49, 5  ;;  %v1359_v1 = vld [vmem:[%s1611_s17 + $0x34] sm:$0x1] }
  0x42   : > { %v731_v13 = vsel %vm1628_vm2, %v1404_v0, %v730_v5  ;;  %v735_v25 = vsel %vm1628_vm2, %v1405_v6, %v734_v33  ;;  %v1344_v12 = vrot.slane %v329_v3, 9  ;;  %v376_v14 = vrot.slane %v206_v17, 5  ;;  %v1358_v3 = vld [vmem:[%s1611_s17 + $0x2c] sm:$0x1] }
  0x43   : > { %788 = vrot.lane.b32.xlu1 %v1416_v7, %s1571_s23  ;;  %v308_v16 = vsel %vm1699_vm5, %v303_v8, %v307_v57  ;;  %v316_v35 = vor.u32 %v315_v9, %v312_v58  ;;  %v1443_v40 = vcombine.low %v731_v13, %v735_v25  ;;  %v1345_v19 = vrot.slane %v330_v34, 9  ;;  %v1361_v58 = vld [vmem:[%s1611_s17 + $0x44] sm:$0x1]  ;;  %v1368_v7 = vld [vmem:[%s1611_s17 + $0x38] sm:$0xe] }
  0x44   : > { %v377_v50 = vsel %vm1628_vm2, %v1344_v12, %v376_v14  ;;  %v380_v41 = vrot.slane %v207_v46, 5  ;;  %v1342_v28 = vrot.slane %v327_v11, 9  ;;  %v368_v17 = vrot.slane %v1794_v61, 5  ;;  %v1350_v61 = vld [vmem:[%s1611_s17 + $0x28] sm:$0xf] }
  0x45   : > { %v317_v29 = vrot.slane %v316_v35, 4  ;;  %942 = vrot.lane.b32.xlu0 %v1443_v40, %s1575_s6  ;;  %v1343_v30 = vrot.slane %v328_v15, 9  ;;  %v372_v31 = vrot.slane %v1803_v4, 5  ;;  %v484_v36 = vshrl.u32 %v1858_v26, 16  ;;  %v1369_v15 = vld [vmem:[%s1611_s17 + $0x40] sm:$0xe] }
  0x46   : > { %v381_v37 = vsel %vm1628_vm2, %v1345_v19, %v380_v41  ;;  %v369_v38 = vsel %vm1628_vm2, %v1342_v28, %v368_v17  ;;  %v487_v39 = vshll.u32 %v1858_v26, 16  ;;  %v498_v43 = vshrl.u32 %v1864_v20, 16  ;;  %v1366_v19 = vld [vmem:[%s1611_s17 + $0x28] sm:$0xe] }
  0x47   : > { %v322_v45 = vsel %vm1699_vm5, %v317_v29, %v321_v10  ;;  %v1421_v46 = vcombine.low %v377_v50, %v381_v37  ;;  %v373_v4 = vsel %vm1628_vm2, %v1343_v30, %v372_v31  ;;  %v486_v47 = vrot.slane %v484_v36, 4  ;;  %v1367_v36 = vld [vmem:[%s1611_s17 + $0x30] sm:$0xe] }
  0x48   : > { %v1417_v51 = vcombine.low %v308_v16, %v322_v45  ;;  %v1420_v32 = vcombine.low %v369_v38, %v373_v4  ;;  %v489_v42 = vrot.slane %v487_v39, 5  ;;  %v500_v44 = vrot.slane %v498_v43, 4 }
  0x49   : > { %v501_v53 = vshll.u32 %v1864_v20, 16  ;;  %v1425_v55 = vcombine.low %v1858_v26, %v1864_v20  ;;  %v456_v56 = vshrl.u32 %v1350_v61, 16  ;;  %v459_v57 = vshll.u32 %v1350_v61, 16 }
  0x4a   : > { %790 = vrot.lane.b32.xlu1 %v1417_v51, %s1571_s23  ;;  %808 = vrot.lane.b32.xlu0 %v1420_v32, %s1569_s19  ;;  %v470_v62 = vshrl.u32 %v1351_v48, 16  ;;  %v473_v63 = vshll.u32 %v1351_v48, 16  ;;  %v1424_v49 = vcombine.low %v1350_v61, %v1351_v48  ;;  %v490_v0 = vor.u32 %v489_v42, %v486_v47  ;;  %v1906_v61 = vld [vmem:[%s1611_s17 + $0x40] sm:$0xf]  ;;  %v1385_v48 = vld [vmem:[%s1611_s17 + $0x48] sm:$0xf] }
  0x4b   : > { %v503_v5 = vrot.slane %v501_v53, 5  ;;  %v458_v6 = vrot.slane %v456_v56, 4  ;;  %v461_v33 = vrot.slane %v459_v57, 5  ;;  %v493_v34 = vshll.u32 %v1360_v52, 16 }
  0x4c   : > { %v472_v8 = vrot.slane %v470_v62, 4  ;;  %v475_v9 = vrot.slane %v473_v63, 5  ;;  %v491_v10 = vrot.slane %v490_v0, 4  ;;  %v507_v11 = vshll.u32 %v1361_v58, 16 }
  0x4d   : > { %v495_v13 = vrot.slane %v493_v34, 5  ;;  %v504_v25 = vor.u32 %v503_v5, %v500_v44  ;;  %v462_v12 = vor.u32 %v461_v33, %v458_v6  ;;  %v465_v14 = vshll.u32 %v1358_v3, 16  ;;  %v1393_v34 = vld [vmem:[%s1611_s17 + $0x4c] sm:$0x1] }
  0x4e   : > { %810 = vrot.lane.b32.xlu1 %v1421_v46, %s1569_s19  ;;  %836 = vrot.lane.b32.xlu0 %v1424_v49, %s1568_s18  ;;  %v509_v26 = vrot.slane %v507_v11, 5  ;;  %v476_v16 = vor.u32 %v475_v9, %v472_v8  ;;  %v479_v35 = vshll.u32 %v1359_v1, 16  ;;  %v1376_v40 = vrot.slane %v1368_v7, 9  ;;  %v1390_v11 = vld [vmem:[%s1611_s17 + $0x34] sm:$0x1] }
  0x4f   : > { %v496_v20 = vsel %vm1699_vm5, %v491_v10, %v495_v13  ;;  %v505_v50 = vrot.slane %v504_v25, 4  ;;  %v463_v41 = vrot.slane %v462_v12, 4  ;;  %v467_v28 = vrot.slane %v465_v14, 5 }
  0x50   : > { %v477_v17 = vrot.slane %v476_v16, 4  ;;  %v481_v29 = vrot.slane %v479_v35, 5  ;;  %v561_v30 = vrot.slane %v1360_v52, 5  ;;  %v1377_v31 = vrot.slane %v1369_v15, 9  ;;  %v1382_v52 = vld [vmem:[%s1611_s17 + $0x30] sm:$0xf] }
  0x51   : > { %v510_v37 = vsel %vm1699_vm5, %v505_v50, %v509_v26  ;;  %v468_v38 = vsel %vm1699_vm5, %v463_v41, %v467_v28  ;;  %v565_v39 = vrot.slane %v1361_v58, 5  ;;  %v1374_v43 = vrot.slane %v1366_v19, 9  ;;  %v1383_v58 = vld [vmem:[%s1611_s17 + $0x38] sm:$0xf]  ;;  %v1391_v15 = vld [vmem:[%s1611_s17 + $0x3c] sm:$0x1] }
  0x52   : > { %838 = vrot.lane.b32.xlu1 %v1425_v55, %s1568_s18  ;;  %v1429_v45 = vcombine.low %v496_v20, %v510_v37  ;;  %v482_v46 = vsel %vm1699_vm5, %v477_v17, %v481_v29  ;;  %v562_v4 = vsel %vm1628_vm2, %v1376_v40, %v561_v30  ;;  %v553_v47 = vrot.slane %v1358_v3, 5  ;;  %v1392_v3 = vld [vmem:[%s1611_s17 + $0x44] sm:$0x1]  ;;  %v1400_v19 = vld [vmem:[%s1611_s17 + $0x40] sm:$0xe] }
  0x53   : > { %v1428_v51 = vcombine.low %v468_v38, %v482_v46  ;;  %v566_v32 = vsel %vm1628_vm2, %v1377_v31, %v565_v39  ;;  %v1375_v42 = vrot.slane %v1367_v36, 9  ;;  %v557_v44 = vrot.slane %v1359_v1, 5  ;;  %v1401_v36 = vld [vmem:[%s1611_s17 + $0x48] sm:$0xe] }
  0x54   : > { %v1433_v53 = vcombine.low %v562_v4, %v566_v32  ;;  %v554_v55 = vsel %vm1628_vm2, %v1374_v43, %v553_v47  ;;  %v669_v56 = vshrl.u32 %v1906_v61, 16  ;;  %v672_v57 = vshll.u32 %v1906_v61, 16 }
  0x55   : > { %856 = vrot.lane.b32.xlu0 %v1428_v51, %s1572_s28  ;;  %v558_v62 = vsel %vm1628_vm2, %v1375_v42, %v557_v44  ;;  %v683_v63 = vshrl.u32 %v1385_v48, 16  ;;  %v686_v49 = vshll.u32 %v1385_v48, 16  ;;  %v1437_v0 = vcombine.low %v1906_v61, %v1385_v48  ;;  %v1398_v61 = vld [vmem:[%s1611_s17 + $0x30] sm:$0xe]  ;;  %v1399_v48 = vld [vmem:[%s1611_s17 + $0x38] sm:$0xe] }
  0x56   : > { %858 = vrot.lane.b32.xlu1 %v1429_v45, %s1572_s28  ;;  %v1432_v1 = vcombine.low %v554_v55, %v558_v62  ;;  %v671_v5 = vrot.slane %v669_v56, 4  ;;  %v674_v6 = vrot.slane %v672_v57, 5  ;;  %v641_v33 = vshrl.u32 %v1382_v52, 16  ;;  %s1576_s17 = smov 0.0   ;;  %s190_s28 = scalar_lea.vmem %s2098_s3, %s1458_s25 }
  0x57   : > { %v685_v7 = vrot.slane %v683_v63, 4  ;;  %v688_v8 = vrot.slane %v686_v49, 5  ;;  %v644_v9 = vshll.u32 %v1382_v52, 16  ;;  %v655_v10 = vshrl.u32 %v1383_v58, 16 }
  0x58   : > { %v643_v13 = vrot.slane %v641_v33, 4  ;;  %v658_v25 = vshll.u32 %v1383_v58, 16  ;;  %v1436_v12 = vcombine.low %v1382_v52, %v1383_v58  ;;  %v675_v14 = vor.u32 %v674_v6, %v671_v5 }
  0x59   : > { %876 = vrot.lane.b32.xlu0 %v1432_v1, %s1570_s20  ;;  %v646_v26 = vrot.slane %v644_v9, 5  ;;  %v657_v16 = vrot.slane %v655_v10, 4  ;;  %v678_v35 = vshll.u32 %v1392_v3, 16  ;;  %v689_v40 = vor.u32 %v688_v8, %v685_v7 }
  0x5a   : > { %878 = vrot.lane.b32.xlu1 %v1433_v53, %s1570_s20  ;;  %v660_v20 = vrot.slane %v658_v25, 5  ;;  %v676_v50 = vrot.slane %v675_v14, 4  ;;  %v692_v41 = vshll.u32 %v1393_v34, 16  ;;  %v650_v28 = vshll.u32 %v1390_v11, 16  ;;  %s1457_s20 = sshll.u32 %s2104_s13, 5 }
  0x5b   : > { %v680_v17 = vrot.slane %v678_v35, 5  ;;  %v690_v29 = vrot.slane %v689_v40, 4  ;;  %v647_v30 = vor.u32 %v646_v26, %v643_v13  ;;  %v664_v31 = vshll.u32 %v1391_v15, 16  ;;  %s185_s23 = scalar_lea.vmem %s2097_s2, %s1457_s20 }
  0x5c   : > { %v694_v37 = vrot.slane %v692_v41, 5  ;;  %v652_v38 = vrot.slane %v650_v28, 5  ;;  %v661_v39 = vor.u32 %v660_v20, %v657_v16  ;;  %v1408_v43 = vrot.slane %v1400_v19, 9 }
  0x5d   : > { %904 = vrot.lane.b32.xlu0 %v1436_v12, %s1573_s4  ;;  %v681_v45 = vsel %vm1699_vm5, %v676_v50, %v680_v17  ;;  %v648_v46 = vrot.slane %v647_v30, 4  ;;  %v666_v4 = vrot.slane %v664_v31, 5  ;;  %v746_v47 = vrot.slane %v1392_v3, 5 }
  0x5e   : > { %906 = vrot.lane.b32.xlu1 %v1437_v0, %s1573_s4  ;;  %v695_v51 = vsel %vm1699_vm5, %v690_v29, %v694_v37  ;;  %v662_v32 = vrot.slane %v661_v39, 4  ;;  %v1409_v42 = vrot.slane %v1401_v36, 9  ;;  %v750_v44 = vrot.slane %v1393_v34, 5 }
  0x5f   : > { %v1441_v52 = vcombine.low %v681_v45, %v695_v51  ;;  %v653_v53 = vsel %vm1699_vm5, %v648_v46, %v652_v38  ;;  %v747_v55 = vsel %vm1628_vm2, %v1408_v43, %v746_v47  ;;  %v1406_v56 = vrot.slane %v1398_v61, 9 }
  0x60   : > { %v667_v57 = vsel %vm1699_vm5, %v662_v32, %v666_v4  ;;  %v751_v58 = vsel %vm1628_vm2, %v1409_v42, %v750_v44  ;;  %v738_v62 = vrot.slane %v1390_v11, 5  ;;  %v1407_v63 = vrot.slane %v1399_v48, 9 }
  0x61   : > { %v1440_v49 = vcombine.low %v653_v53, %v667_v57  ;;  %v742_v0 = vrot.slane %v1391_v15, 5  ;;  %v1445_v3 = vcombine.low %v747_v55, %v751_v58  ;;  %v1411_v5 = vcombine.low %v1694_v22, %v1704_v27 }
  0x62   : > { %926 = vrot.lane.b32.xlu1 %v1441_v52, %s1574_s5  ;;  %v739_v1 = vsel %vm1628_vm2, %v1406_v56, %v738_v62  ;;  %v1412_v34 = vcombine.low %v1790_v54, %v1797_v2  ;;  %v1413_v7 = vcombine.low %v1820_v18, %v1825_v21  ;;  %v1071_v22 = vsel %vm1069_vm6, %v1556_v24, 0 }
  0x63   : > { %924 = vrot.lane.b32.xlu0 %v1440_v49, %s1574_s5  ;;  %v743_v6 = vsel %vm1628_vm2, %v1407_v63, %v742_v0  ;;  %1496 = vmatpush3.bf16.msra.mxu0 %v1071_v22  ;;  %v1410_v25 = vcombine.low %v1671_v59, %v1674_v60 }
  0x64   : > { %v1444_v33 = vcombine.low %v739_v1, %v743_v6  ;;  %1514 = vmatpush3.bf16.msra.mxu1 %v1071_v22 }
  0x66   : > { %946 = vrot.lane.b32.xlu1 %v1445_v3, %s1575_s6 }
  0x67   : > { %944 = vrot.lane.b32.xlu0 %v1444_v33, %s1575_s6 }
  0x86   : > { %v835_v27 = vpop.permute.xlu1 %834 }
  0x87   : > { %v833_v23 = vpop.permute.xlu0 %832 }
  0x8f   : > { %v805_v8 = vpop.permute.xlu1 %804 }
  0x91   : > { %v873_v9 = vpop.permute.xlu0 %872 }
  0x94   : > { %v807_v10 = vpop.permute.xlu1 %806 }
  0x99   : > { %v875_v13 = vpop.permute.xlu1 %874 }
  0x9b   : > { %v785_v11 = vpop.permute.xlu0 %784 }
  0x9c   : > { %v951_v15 = vsel %vm948_vm7, %v1410_v25, %v785_v11 }
  0x9d   : > { %v963_v35 = vsel %vm961_vm8, %v951_v15, %v805_v8 }
  0x9e   : > { %v972_v50 = vsel %vm970_vm9, %v963_v35, %v833_v23 }
  0xa0   : > { %v855_v14 = vpop.permute.xlu1 %854 }
  0xa3   : > { %v787_v12 = vpop.permute.xlu0 %786 }
  0xa4   : > { %v954_v16 = vsel %vm948_vm7, %v1411_v5, %v787_v12  ;;  %v903_v40 = vpop.permute.xlu1 %902 }
  0xa5   : > { %v965_v20 = vsel %vm961_vm8, %v954_v16, %v807_v10 }
  0xa6   : > { %v974_v60 = vsel %vm970_vm9, %v965_v20, %v835_v27 }
  0xa7   : > { %v853_v26 = vpop.permute.xlu0 %852  ;;  %v983_v29 = vsel %vm979_vm10, %v974_v60, %v855_v14 }
  0xa8   : > { %v981_v59 = vsel %vm979_vm10, %v972_v50, %v853_v26  ;;  %v992_v38 = vsel %vm988_vm11, %v983_v29, %v875_v13 }
  0xa9   : > { %v990_v17 = vsel %vm988_vm11, %v981_v59, %v873_v9  ;;  %v1001_v39 = vsel %vm997_vm12, %v992_v38, %v903_v40 }
  0xab   : > { %v901_v19 = vpop.permute.xlu0 %900  ;;  %v923_v28 = vpop.permute.xlu1 %922 }
  0xac   : > { %v999_v30 = vsel %vm997_vm12, %v990_v17, %v901_v19  ;;  %v1010_v61 = vsel %vm1006_vm13, %v1001_v39, %v923_v28 }
  0xaf   : > { %v921_v41 = vpop.permute.xlu0 %920 }
  0xb0   : > { %v1008_v31 = vsel %vm1006_vm13, %v999_v30, %v921_v41 }
  0xb3   : > { %v941_v36 = vpop.permute.xlu0 %940 }
  0xb4   : > { %v1017_v37 = vsel %vm1015_vm14, %v1008_v31, %v941_v36 }
  0xb5   : > { %1497 = vmatprep.mubr.msk.bf16.mxu0 %vm1060_vm15, %v1017_v37  ;;  %v789_v43 = vpop.permute.xlu1 %788 }
  0xb6   : > { %v957_v58 = vsel %vm948_vm7, %v1412_v34, %v789_v43 }
  0xb7   : > { %v943_v45 = vpop.permute.xlu0 %942 }
  0xb8   : > { %v1019_v46 = vsel %vm1015_vm14, %v1010_v61, %v943_v45 }
  0xb9   : > { %1498 = vmatmul.mubr.msk.bf16.vlgmr.msra.gmra.mrb[0].mxu0 %vm1060_vm15, %v1019_v46 }
  0xbc   : > { %v791_v4 = vpop.permute.xlu1 %790  ;;  %v809_v47 = vpop.permute.xlu0 %808 }
  0xbd   : > { %v960_v57 = vsel %vm948_vm7, %v1413_v7, %v791_v4  ;;  %v967_v62 = vsel %vm961_vm8, %v957_v58, %v809_v47 }
  0xc0   : > { %v811_v48 = vpop.permute.xlu1 %810  ;;  %v837_v51 = vpop.permute.xlu0 %836 }
  0xc1   : > { %v969_v49 = vsel %vm961_vm8, %v960_v57, %v811_v48  ;;  %v976_v0 = vsel %vm970_vm9, %v967_v62, %v837_v51 }
  0xc4   : > { %v839_v32 = vpop.permute.xlu1 %838 }
  0xc5   : > { %v978_v1 = vsel %vm970_vm9, %v969_v49, %v839_v32 }
  0xc7   : > { %v857_v42 = vpop.permute.xlu0 %856 }
  0xc8   : > { %v859_v44 = vpop.permute.xlu1 %858  ;;  %v985_v5 = vsel %vm979_vm10, %v976_v0, %v857_v42 }
  0xc9   : > { %v987_v18 = vsel %vm979_vm10, %v978_v1, %v859_v44 }
  0xcb   : > { %v877_v52 = vpop.permute.xlu0 %876 }
  0xcc   : > { %v879_v53 = vpop.permute.xlu1 %878  ;;  %v994_v21 = vsel %vm988_vm11, %v985_v5, %v877_v52 }
  0xcd   : > { %v996_v54 = vsel %vm988_vm11, %v987_v18, %v879_v53 }
  0xcf   : > { %v905_v55 = vpop.permute.xlu0 %904 }
  0xd0   : > { %v907_v56 = vpop.permute.xlu1 %906  ;;  %v1003_v2 = vsel %vm997_vm12, %v994_v21, %v905_v55 }
  0xd1   : > { %v1005_v6 = vsel %vm997_vm12, %v996_v54, %v907_v56 }
  0xd4   : > { %v927_v63 = vpop.permute.xlu1 %926 }
  0xd5   : > { %v925_v3 = vpop.permute.xlu0 %924  ;;  %v1014_v7 = vsel %vm1006_vm13, %v1005_v6, %v927_v63 }
  0xd6   : > { %v1012_v33 = vsel %vm1006_vm13, %v1003_v2, %v925_v3 }
  0xd8   : > { %v947_v24 = vpop.permute.xlu1 %946 }
  0xd9   : > { %v945_v34 = vpop.permute.xlu0 %944  ;;  %v1023_v27 = vsel %vm1015_vm14, %v1014_v7, %v947_v24 }
  0xda   : > { %v1021_v22 = vsel %vm1015_vm14, %v1012_v33, %v945_v34 }
  0xdb   : > { %1501 = vmatprep.mubr.msk.bf16.mxu1 %vm1060_vm15, %v1021_v22 }
  0xdc   : > { %1502 = vmatmul.mubr.msk.bf16.vlgmr.msra.gmra.mrb[0].mxu1 %vm1060_vm15, %v1023_v27 }
 0x18c   : > { %v2012_v23 = vpop.f32.mrb[0].mxu0 }
 0x18d   : > { %v2014_v8 = vpop.f32.mrb[1].mxu0  ;;  %v1165_v13 = vmul.f32 %v2012_v23, %v2012_v23  ;;  %v1141_v26 = vsel %vm948_vm7, %v2012_v23, 0.0 }
 0x18e   : > { %v1163_v9 = vmul.f32 %v2014_v8, %v2014_v8  ;;  %v2018_v10 = vpop.f32.mrb[2].mxu0  ;;  %v1138_v25 = vsel %vm948_vm7, %v2014_v8, 0.0 }
 0x18f   : > { %v2020_v11 = vpop.f32.mrb[3].mxu0  ;;  %v1166_v35 = vmul.f32 %v2018_v10, %v2018_v10  ;;  %v1174_v50 = vsel %vm948_vm7, %v1165_v13, 0.0  ;;  %v1143_v59 = vsel %vm948_vm7, %v2018_v10, 0.0 }
 0x190   : > { %v1139_v12 = vsel %vm948_vm7, %v2020_v11, 0.0  ;;  %v1164_v14 = vmul.f32 %v2020_v11, %v2020_v11  ;;  %v1171_v16 = vsel %vm948_vm7, %v1163_v9, 0.0 }
 0x191   : > { %v1140_v15 = vadd.f32 %v1139_v12, %v1138_v25  ;;  %v1176_v28 = vsel %vm948_vm7, %v1166_v35, 0.0 }
 0x192   : > { %v1172_v40 = vsel %vm948_vm7, %v1164_v14, 0.0 }
 0x193   : > { %v1142_v19 = vadd.f32 %v1141_v26, %v1140_v15  ;;  %v1173_v20 = vadd.f32 %v1172_v40, %v1171_v16  ;;  %v1477_v26 = vld [vmem:[%s185_s23 + $0x18] sm:$0xff]  }
 0x195   : > { %v1175_v60 = vadd.f32 %v1174_v50, %v1173_v20  ;;  %v1144_v41 = vadd.f32 %v1143_v59, %v1142_v19 }
 0x197   : > { %v1177_v17 = vadd.f32 %v1176_v28, %v1175_v60  ;;  %v1473_v60 = vunpack.c.l.bf16 %v1477_v26 }
 0x1af   : > { %v2040_v29 = vpop.f32.mrb[0].mxu1 }
 0x1b0   : > { %v2042_v30 = vpop.f32.mrb[1].mxu1  ;;  %v1169_v43 = vmul.f32 %v2040_v29, %v2040_v29  ;;  %v1149_v48 = vsel %vm948_vm7, %v2040_v29, 0.0 }
 0x1b1   : > { %v1145_v31 = vsel %vm948_vm7, %v2042_v30, 0.0  ;;  %v1167_v36 = vmul.f32 %v2042_v30, %v2042_v30  ;;  %v2048_v37 = vpop.f32.mrb[2].mxu1 }
 0x1b2   : > { %v1146_v38 = vadd.f32 %v1145_v31, %v1144_v41  ;;  %v2050_v39 = vpop.f32.mrb[3].mxu1  ;;  %v1170_v51 = vmul.f32 %v2048_v37, %v2048_v37  ;;  %v1151_v52 = vsel %vm948_vm7, %v2048_v37, 0.0  ;;  %v1182_v53 = vsel %vm948_vm7, %v1169_v43, 0.0 }
 0x1b3   : > { %v1178_v61 = vsel %vm948_vm7, %v1167_v36, 0.0  ;;  %v1147_v45 = vsel %vm948_vm7, %v2050_v39, 0.0  ;;  %v1168_v46 = vmul.f32 %v2050_v39, %v2050_v39  ;;  %v1474_v41 = vunpack.c.h.bf16 %v1477_v26 }
 0x1b4   : > { %v1179_v4 = vadd.f32 %v1178_v61, %v1177_v17  ;;  %v1148_v47 = vadd.f32 %v1147_v45, %v1146_v38  ;;  %v1184_v57 = vsel %vm948_vm7, %v1170_v51, 0.0 }
 0x1b5   : > { %v1180_v32 = vsel %vm948_vm7, %v1168_v46, 0.0 }
 0x1b6   : > { %v1181_v42 = vadd.f32 %v1180_v32, %v1179_v4  ;;  %v1150_v44 = vadd.f32 %v1149_v48, %v1148_v47 }
 0x1b8   : > { %v1152_v55 = vadd.f32 %v1151_v52, %v1150_v44  ;;  %v1183_v56 = vadd.f32 %v1182_v53, %v1181_v42 }
 0x1ba   : > { %1153 = vadd.xlane.f32.xlu0 %v1152_v55  ;;  %v1185_v58 = vadd.f32 %v1184_v57, %v1183_v56 }
 0x1bc   : > { %1186 = vadd.xlane.f32.xlu1 %v1185_v58 }
 0x247   : > { %v1154_v62 = vpop.xlane.xlu0 %1153 }
 0x248   : > { %v1155_v63 = vrot.slane %v1154_v62, 4 }
 0x249   : > { %v1187_v49 = vpop.xlane.xlu1 %1186 }
 0x24a   : > { %v1156_v0 = vadd.f32 %v1155_v63, %v1154_v62  ;;  %v1188_v3 = vrot.slane %v1187_v49, 4 }
 0x24c   : > { %v1157_v1 = vrot.slane %v1156_v0, 2  ;;  %v1189_v5 = vadd.f32 %v1188_v3, %v1187_v49 }
 0x24e   : > { %v1190_v18 = vrot.slane %v1189_v5, 2  ;;  %v1158_v21 = vadd.f32 %v1157_v1, %v1156_v0 }
 0x250   : > { %v1191_v54 = vadd.f32 %v1190_v18, %v1189_v5  ;;  %v1159_v2 = vrot.slane %v1158_v21, 1 }
 0x252   : > { %v1160_v24 = vadd.f32 %v1159_v2, %v1158_v21  ;;  %v1192_v6 = vrot.slane %v1191_v54, 1 }
 0x254   : > { %1518 = vpush %v1160_v24  ;;  %v1193_v33 = vadd.f32 %v1192_v6, %v1191_v54 }
 0x256   : > { %1520 = vpush %v1193_v33 }
 0x285   : > { %s1519_s9 = spop %1518 }
 0x286   : > { %s1162_s10 = smul.f32 0.001953125, %s1519_s9 }
 0x287   : > { %s1521_s11 = spop %1520 }
 0x288   : > { %s1196_s14 = smul.f32 %s1162_s10, %s1162_s10  ;;  %v1198_v34 = vstv %s1162_s10 }
 0x289   : > { %s1195_s15 = smul.f32 0.001953125, %s1521_s11  ;;  %v1199_v7 = vsub.f32 %v2014_v8, %v1198_v34  ;;  %v1200_v22 = vsub.f32 %v2020_v11, %v1198_v34  ;;  %v1201_v27 = vsub.f32 %v2012_v23, %v1198_v34  ;;  %v1202_v9 = vsub.f32 %v2018_v10, %v1198_v34  ;;  %v1460_v23 = vld [vmem:[%s185_s23] sm:$0xff]   ;;  %v1475_v10 = vld [vmem:[%s185_s23 + $0x8] sm:$0xff]   ;;  %v1476_v11 = vld [vmem:[%s185_s23 + $0x10] sm:$0xff]  }
 0x28a   : > { %v1203_v13 = vsub.f32 %v2042_v30, %v1198_v34  ;;  %v1204_v25 = vsub.f32 %v2050_v39, %v1198_v34  ;;  %v1205_v12 = vsub.f32 %v2040_v29, %v1198_v34  ;;  %v1206_v14 = vsub.f32 %v2048_v37, %v1198_v34 }
 0x28b   : > { %s1197_s16 = ssub.f32 %s1195_s15, %s1196_s14  ;;  %v1461_v16 = vunpack.c.l.bf16 %v1460_v23  ;;  %v1462_v35 = vunpack.c.h.bf16 %v1460_v23  ;;  %v1465_v40 = vunpack.c.l.bf16 %v1475_v10  ;;  %v1466_v19 = vunpack.c.h.bf16 %v1475_v10 }
 0x28c   : > { %v1469_v20 = vunpack.c.l.bf16 %v1476_v11  ;;  %v1470_v59 = vunpack.c.h.bf16 %v1476_v11 }
 0x28d   : > { %s1207_s18 = smax.f32 %s1576_s17, %s1197_s16 }
 0x28e   : > { %s1208_s19 = sadd.f32 1e-05, %s1207_s18 }
 0x290   : > { %v1209_v8 = vstv %s1208_s19 }
 0x291   : > { %1558 = vrsqrt.f32 %v1209_v8 }
 0x29b   : > { %v1559_v15 = vpop.eup %1558 }
 0x29c   : > { %1522 = vpush %v1559_v15 }
 0x2cd   : > { %s1523_s24 = spop %1522 }
 0x2ce   : > { %v1212_v50 = vstv %s1523_s24 }
 0x2cf   : > { %v1213_v28 = vmul.f32 %v1212_v50, %v1199_v7  ;;  %v1214_v17 = vmul.f32 %v1212_v50, %v1200_v22  ;;  %v1215_v29 = vmul.f32 %v1212_v50, %v1201_v27  ;;  %v1216_v30 = vmul.f32 %v1212_v50, %v1202_v9 }
 0x2d0   : > { %v1217_v31 = vmul.f32 %v1212_v50, %v1203_v13  ;;  %v1218_v36 = vmul.f32 %v1212_v50, %v1204_v25  ;;  %v1219_v37 = vmul.f32 %v1212_v50, %v1205_v12  ;;  %v1220_v38 = vmul.f32 %v1212_v50, %v1206_v14 }
 0x2d1   : > { %v1237_v39 = vadd.f32 %v1461_v16, %v1213_v28  ;;  %v1238_v43 = vadd.f32 %v1462_v35, %v1214_v17  ;;  %v1239_v61 = vadd.f32 %v1465_v40, %v1215_v29  ;;  %v1240_v45 = vadd.f32 %v1466_v19, %v1216_v30 }
 0x2d2   : > { %v1241_v46 = vadd.f32 %v1469_v20, %v1217_v31  ;;  %v1242_v4 = vadd.f32 %v1470_v59, %v1218_v36  ;;  %v1243_v47 = vadd.f32 %v1473_v60, %v1219_v37  ;;  %v1244_v48 = vadd.f32 %v1474_v41, %v1220_v38 }
 0x2d3   : > { %v1245_v51 = vmax.f32 %v1237_v39, 0.0  ;;  %v1246_v32 = vmax.f32 %v1238_v43, 0.0  ;;  %v1247_v42 = vmax.f32 %v1239_v61, 0.0  ;;  %v1248_v44 = vmax.f32 %v1240_v45, 0.0 }
 0x2d4   : > { %v1249_v52 = vmax.f32 %v1241_v46, 0.0  ;;  %v1250_v53 = vmax.f32 %v1242_v4, 0.0  ;;  %v1251_v55 = vmax.f32 %v1243_v47, 0.0  ;;  %v1252_v56 = vmax.f32 %v1244_v48, 0.0 }
 0x2d5   : > { %1253 = vst.msk [vmem:[%s190_s28] sm:$0xff] %vm948_vm7, %v1245_v51  ;;  %1254 = vst.msk [vmem:[%s190_s28 + $0x8] sm:$0xff] %vm948_vm7, %v1246_v32 }
 0x2d6   : > { %1255 = vst.msk [vmem:[%s190_s28 + $0x10] sm:$0xff] %vm948_vm7, %v1247_v42  ;;  %1256 = vst.msk [vmem:[%s190_s28 + $0x18] sm:$0xff] %vm948_vm7, %v1248_v44 }
 0x2d7   : > { %1257 = vst.msk [vmem:[%s190_s28 + $0x20] sm:$0xff] %vm948_vm7, %v1249_v52  ;;  %1258 = vst.msk [vmem:[%s190_s28 + $0x28] sm:$0xff] %vm948_vm7, %v1250_v53 }
 0x2d8   : > { %1259 = vst.msk [vmem:[%s190_s28 + $0x30] sm:$0xff] %vm948_vm7, %v1251_v55  ;;  %1260 = vst.msk [vmem:[%s190_s28 + $0x38] sm:$0xff] %vm948_vm7, %v1252_v56 }
 0x2d9 PF: > { %s13_s12 = sadd.s32 1, %s1566_s12  }
 0x2da   : > { %p10_p4 = scmp.ge.s32.totalorder %s13_s12, 4  }
 0x2dc   :  { %12 = sbr.rel (!%p10_p4) target bundleno = 1 (0x1), region = 67 }

// kernel: basic_block_forward.2
= control target key start
LH: loop header
LB: loop body
LE: loop exit
PB: predicated region body
PF: predicated region fallthrough
CT: control target
= control target key end

     0   :  { %s1921_s15 = smov 0   ;;  %s2515_s0 = inlined_call_operand.vmem [shape: bf16[2,4,9,9,4], index: 0, kind: input, shape index: {}]   ;;  %s2516_s1 = inlined_call_operand.vmem [shape: bf16[1,36,8], index: 1, kind: input, shape index: {}]   ;;  %s2517_s2 = inlined_call_operand.vmem [shape: bf16[1,4,8], index: 2, kind: input, shape index: {}]   ;;  %s2518_s3 = inlined_call_operand.vmem [shape: bf16[2,10,10,8], index: 3, kind: output, shape index: {0}]   ;;  %s2519_s4 = inlined_call_operand.vmem [shape: bf16[2,8,8,8], index: 4, kind: output, shape index: {1}]  }
   0x1 LB: > { %s1598_s16 = sadd.s32 4294967295, %s1884_s15   ;;  %p1602_p0 = scmp.ge.s32.totalorder %s1884_s15, 1  ;;  %s1884_s15 = sphi %s1921_s15, %s15_s15  }
   0x2   : > { %p165_p1 = scmp.lt.s32.totalorder %s1884_s15, 3 }
   0x4   : > { %p166_p2 = pnand %p1602_p0, %p165_p1 }
   0x5   : > { %p196_p3 = scmp.lt.s32.totalorder (!%p166_p2), %s1598_s16, 1  ;;  %s1886_s21 = smov (!%p166_p2), 4   ;;  %vm237_vm0 = vsmask.f32 (!%p166_p2), 3328  ;;  %vm238_vm1 = vsmask.f32 (!%p166_p2), 7440 }
   0x6   : > { %169 = sbr.rel (%p166_p2) target bundleno = 793 (0x319), region = 32  ;;  %s1887_s22 = smov (!%p166_p2), 12   ;;  %vm1980_vm2 = vmor (!%p166_p2), %vm237_vm0, %vm238_vm1  ;;  %vm848_vm3 = vcmask (!%p166_p2), 31744   ;;  %vm953_vm4 = vcmask (!%p166_p2), 1041408   ;;  %vm861_vm5 = vcmask (!%p166_p2), 64512   ;;  %vm870_vm6 = vcmask (!%p166_p2), 97280  }
   0x7   : > { %s1888_s23 = smov (!%p166_p2), 16   ;;  %s1889_s26 = smov (!%p166_p2), 8   ;;  %vm879_vm7 = vcmask (!%p166_p2), 130048   ;;  %vm888_vm8 = vcmask (!%p166_p2), 162816   ;;  %vm897_vm9 = vcmask (!%p166_p2), 195584   ;;  %vm906_vm10 = vcmask (!%p166_p2), 228352  }
   0x8   : > { %s1890_s29 = smov (!%p166_p2), 20   ;;  %s1891_s30 = smov (!%p166_p2), 24   ;;  %vm915_vm11 = vcmask (!%p166_p2), 261120   ;;  %vm944_vm12 = vcmask (!%p166_p2), 293888   ;;  %vm1113_vm13 = vcmask (!%p166_p2), 60416   ;;  %vm1115_vm14 = vcmask (!%p166_p2), 57344  }
   0x9   : > { %s1892_s5 = smov (!%p166_p2), 28   ;;  %s1893_s6 = smov (!%p166_p2), 32   ;;  %vm1249_vm15 = vsmask.f32 (!%p166_p2), 7938  ;;  %vm1255_vm0 = vsmask.f32 (!%p166_p2), 256 }
   0xa   : > { %vm2410_vm1 = vmand (!%p166_p2), %vm1113_vm13, %vm1249_vm15 }
   0xd   : > { %s2527_s16 = smov (!%p196_p3, %s1598_s16), 1 }
   0xe   : > { %s1811_s17 = smul.u32 288, %s2527_s16  ;;  %s1764_s9 = sshll.u32 %s2527_s16, 5 }
   0xf   : > { %s1812_s11 = smul.u32 80, %s2527_s16  ;;  %s210_s13 = scalar_lea.vmem %s2519_s4, %s1764_s9 }
  0x10   : > { %s1935_s20 = scalar_lea.vmem %s2515_s0, %s1811_s17 }
  0x11   : > { %v1843_v0 = vld [vmem:[%s1935_s20 + $0x48] ss:$8 sps:$4 sm:$0xff]   ;;  %v1617_v1 = vld [vmem:[%s1935_s20 + $0xa0] sm:$0xf]  ;;  %v1616_v16 = vld [vmem:[%s1935_s20 + $0x98] sm:$0xf]  ;;  %s2348_s14 = scalar_lea.vmem %s2518_s3, %s1812_s11 }
  0x12   : > { %v1618_v2 = vld [vmem:[%s1935_s20 + $0xa8] sm:$0xf]  ;;  %668 = vrot.lane.b32.xlu0 %v1843_v0, %s1886_s21  ;;  %v407_v6 = vshrl.u32 %v1617_v1, 16  ;;  %v410_v7 = vshll.u32 %v1617_v1, 16  ;;  %v1845_v8 = vld [vmem:[%s1935_s20 + $0x58] ss:$8 sps:$4 sm:$0xff]  }
  0x13   : > { %v421_v3 = vshrl.u32 %v1618_v2, 16  ;;  %v424_v4 = vshll.u32 %v1618_v2, 16  ;;  %v1676_v5 = vcombine.low %v1617_v1, %v1618_v2  ;;  %v1846_v13 = vld [vmem:[%s1935_s20 + $0xe8] ss:$8 sps:$4 sm:$0xff]   ;;  %v1948_v19 = vld [vmem:[%s1935_s20] sm:$0xf] }
  0x14   : > { %v409_v11 = vrot.slane %v407_v6, 4  ;;  %v412_v12 = vrot.slane %v410_v7, 5  ;;  %v1615_v14 = vld [vmem:[%s1935_s20 + $0x90] sm:$0xf]  ;;  %v393_v21 = vshrl.u32 %v1616_v16, 16  ;;  %v396_v22 = vshll.u32 %v1616_v16, 16 }
  0x15   : > { %v423_v9 = vrot.slane %v421_v3, 4  ;;  %v426_v10 = vrot.slane %v424_v4, 5  ;;  %718 = vrot.lane.b32.xlu1 %v1676_v5, %s1887_s22  ;;  %v379_v17 = vshrl.u32 %v1615_v14, 16  ;;  %v382_v18 = vshll.u32 %v1615_v14, 16  ;;  %v1951_v24 = vld [vmem:[%s1935_s20 + $0x8] sm:$0xf] }
  0x16   : > { %670 = vrot.lane.b32.xlu0 %v1845_v8, %s1886_s21  ;;  %v413_v20 = vor.u32 %v412_v12, %v409_v11  ;;  %v1675_v23 = vcombine.low %v1615_v14, %v1616_v16  ;;  %v229_v25 = vld [vmem:[%s1935_s20 + $0x4] sm:$0x1]  ;;  %v230_v29 = vld [vmem:[%s1935_s20 + $0xc] sm:$0x1]  ;;  %v241_v30 = vshrl.u32 %v1948_v19, 16  ;;  %v395_v32 = vrot.slane %v393_v21, 4 }
  0x17   : > { %v427_v15 = vor.u32 %v426_v10, %v423_v9  ;;  %v381_v27 = vrot.slane %v379_v17, 4  ;;  %v384_v28 = vrot.slane %v382_v18, 5  ;;  %v398_v33 = vrot.slane %v396_v22, 5  ;;  %v1848_v41 = vld [vmem:[%s1935_s20 + $0xd8] ss:$8 sps:$4 sm:$0xff]  }
  0x18   : > { %v1959_v31 = vrot.slane %v413_v20, 4  ;;  %v244_v34 = vshll.u32 %v1948_v19, 16  ;;  %v243_v35 = vrot.slane %v241_v30, 4  ;;  %v250_v36 = vshll.u32 %v229_v25, 16  ;;  %v1967_v42 = vld [vmem:[%s1935_s20 + $0x10] sm:$0xf] }
  0x19   : > { %v1954_v26 = vrot.slane %v427_v15, 4  ;;  %746 = vrot.lane.b32.xlu1 %v1846_v13, %s1888_s23  ;;  %v255_v37 = vshrl.u32 %v1951_v24, 16  ;;  %v258_v38 = vshll.u32 %v1951_v24, 16  ;;  %v264_v40 = vshll.u32 %v230_v29, 16  ;;  %v1970_v48 = vld [vmem:[%s1935_s20 + $0x18] sm:$0xf] }
  0x1a   : > { %716 = vrot.lane.b32.xlu0 %v1675_v23, %s1887_s22  ;;  %v246_v39 = vrot.slane %v244_v34, 5  ;;  %v385_v43 = vor.u32 %v384_v28, %v381_v27  ;;  %v399_v44 = vor.u32 %v398_v33, %v395_v32  ;;  %v252_v45 = vrot.slane %v250_v36, 5  ;;  %v231_v52 = vld [vmem:[%s1935_s20 + $0x14] sm:$0x1]  ;;  %v232_v53 = vld [vmem:[%s1935_s20 + $0x1c] sm:$0x1] }
  0x1b   : > { %v257_v46 = vrot.slane %v255_v37, 4  ;;  %v260_v47 = vrot.slane %v258_v38, 5  ;;  %v269_v49 = vshrl.u32 %v1967_v42, 16  ;;  %v266_v51 = vrot.slane %v264_v40, 5  ;;  %v1631_v61 = vld [vmem:[%s1935_s20 + $0x94] sm:$0x1] }
  0x1c   : > { %v247_v50 = vor.u32 %v246_v39, %v243_v35  ;;  %v272_v54 = vshll.u32 %v1967_v42, 16  ;;  %v1663_v55 = vcombine.low %v1948_v19, %v1951_v24  ;;  %v278_v59 = vshll.u32 %v231_v52, 16  ;;  %v1632_v2 = vld [vmem:[%s1935_s20 + $0x9c] sm:$0x1]  ;;  %v1633_v7 = vld [vmem:[%s1935_s20 + $0xa4] sm:$0x1] }
  0x1d   : > { %v261_v57 = vor.u32 %v260_v47, %v257_v46  ;;  %v271_v58 = vrot.slane %v269_v49, 4  ;;  %v283_v60 = vshrl.u32 %v1970_v48, 16  ;;  %v286_v0 = vshll.u32 %v1970_v48, 16  ;;  %v1634_v12 = vld [vmem:[%s1935_s20 + $0xac] sm:$0x1]  ;;  %v1865_v18 = vld [vmem:[%s2516_s1] sm:$0xff]  }
  0x1e   : > { %744 = vrot.lane.b32.xlu0 %v1848_v41, %s1888_s23  ;;  %v248_v62 = vrot.slane %v247_v50, 4  ;;  %v274_v63 = vrot.slane %v272_v54, 5  ;;  %v292_v1 = vshll.u32 %v232_v53, 16  ;;  %v280_v4 = vrot.slane %v278_v59, 5  ;;  %v1994_v13 = vld [vmem:[%s1935_s20 + $0x8] sm:$0xf]  ;;  %1785 = vmatprep.subr.bf16.mxu0 %v1865_v18 }
  0x1f   : > { %v262_v3 = vrot.slane %v261_v57, 4  ;;  %v285_v5 = vrot.slane %v283_v60, 4  ;;  %v386_v6 = vrot.slane %v385_v43, 4  ;;  %v288_v10 = vrot.slane %v286_v0, 5  ;;  %v1640_v25 = vld [vmem:[%s1935_s20 + $0x10] sm:$0xf]  ;;  %1786 = vmatpush3.bf16.msra.mxu0 %v1865_v18 }
  0x20   : > { %v253_v8 = vsel %vm1980_vm2, %v248_v62, %v252_v45  ;;  %v275_v9 = vor.u32 %v274_v63, %v271_v58  ;;  %v294_v11 = vrot.slane %v292_v1, 5  ;;  %v388_v15 = vshll.u32 %v1631_v61, 16  ;;  %v2012_v40 = vld [vmem:[%s1935_s20 + $0x18] sm:$0xf]  ;;  %v1642_v46 = vld [vmem:[%s1935_s20 + $0x20] sm:$0xf] }
  0x21   : > { %v267_v14 = vsel %vm1980_vm2, %v262_v3, %v266_v51  ;;  %v400_v16 = vrot.slane %v399_v44, 4  ;;  %v402_v17 = vshll.u32 %v1632_v2, 16  ;;  %v289_v22 = vor.u32 %v288_v10, %v285_v5  ;;  %v1866_v47 = vld [vmem:[%s2516_s1 + $0x8] sm:$0xff]   ;;  %v1656_v62 = vld [vmem:[%s1935_s20 + $0x14] sm:$0x1] }
  0x22   : > { %v1671_v20 = vcombine.low %v253_v8, %v267_v14  ;;  %v276_v21 = vrot.slane %v275_v9, 4  ;;  %v416_v23 = vshll.u32 %v1633_v7, 16  ;;  %v390_v27 = vrot.slane %v388_v15, 5  ;;  %v1655_v53 = vld [vmem:[%s1935_s20 + $0xc] sm:$0x1]  ;;  %1787 = vmatprep.subr.bf16.mxu0 %v1866_v47 }
  0x23   : > { %v404_v28 = vrot.slane %v402_v17, 5  ;;  %v430_v29 = vshll.u32 %v1634_v12, 16  ;;  %v517_v30 = vshrl.u32 %v1994_v13, 16  ;;  %v290_v33 = vrot.slane %v289_v22, 4  ;;  %1788 = vmatpush3.bf16.msra.mxu0 %v1866_v47  ;;  %v1851_v2 = vld [vmem:[%s1935_s20 + $0x50] ss:$8 sps:$4 sm:$0xff]  }
  0x24   : > { %688 = vrot.lane.b32.xlu1 %v1671_v20, %s1889_s26  ;;  %v281_v32 = vsel %vm1980_vm2, %v276_v21, %v280_v4  ;;  %v418_v34 = vrot.slane %v416_v23, 5  ;;  %v520_v35 = vshll.u32 %v1994_v13, 16  ;;  %v391_v36 = vsel %vm1980_vm2, %v386_v6, %v390_v27  ;;  %v1657_v4 = vld [vmem:[%s1935_s20 + $0x1c] sm:$0x1]  ;;  %v1658_v5 = vld [vmem:[%s1935_s20 + $0x24] sm:$0x1] }
  0x25   : > { %v405_v37 = vsel %vm1980_vm2, %v400_v16, %v404_v28  ;;  %v432_v38 = vrot.slane %v430_v29, 5  ;;  %v519_v39 = vrot.slane %v517_v30, 4  ;;  %v295_v41 = vsel %vm1980_vm2, %v290_v33, %v294_v11  ;;  %v2040_v22 = vld [vmem:[%s1935_s20 + $0x20] sm:$0xf]  ;;  %v2047_v29 = vld [vmem:[%s1935_s20 + $0x28] sm:$0xf] }
  0x26   : > { %v1683_v43 = vcombine.low %v391_v36, %v405_v37  ;;  %v419_v44 = vsel %vm1980_vm2, %v1959_v31, %v418_v34  ;;  %v522_v45 = vrot.slane %v520_v35, 5  ;;  %v1672_v49 = vcombine.low %v281_v32, %v295_v41  ;;  %v233_v30 = vld [vmem:[%s1935_s20 + $0x24] sm:$0x1]  ;;  %v234_v34 = vld [vmem:[%s1935_s20 + $0x2c] sm:$0x1] }
  0x27   : > { %v433_v50 = vsel %vm1980_vm2, %v1954_v26, %v432_v38  ;;  %v531_v51 = vshrl.u32 %v1640_v25, 16  ;;  %v534_v52 = vshll.u32 %v1640_v25, 16  ;;  %v1687_v54 = vcombine.low %v1994_v13, %v1640_v25  ;;  %v2059_v37 = vld [vmem:[%s1935_s20 + $0x30] sm:$0xf]  ;;  %v1852_v38 = vld [vmem:[%s1935_s20 + $0x60] ss:$8 sps:$4 sm:$0xff]  }
  0x28   : > { %764 = vrot.lane.b32.xlu0 %v1683_v43, %s1890_s29  ;;  %v1684_v31 = vcombine.low %v419_v44, %v433_v50  ;;  %v545_v57 = vshrl.u32 %v2012_v40, 16  ;;  %v548_v58 = vshll.u32 %v2012_v40, 16  ;;  %690 = vrot.lane.b32.xlu1 %v1672_v49, %s1889_s26  ;;  %v559_v60 = vshrl.u32 %v1642_v46, 16  ;;  %v235_v44 = vld [vmem:[%s1935_s20 + $0x34] sm:$0x1] }
  0x29   : > { %v533_v26 = vrot.slane %v531_v51, 4  ;;  %v536_v59 = vrot.slane %v534_v52, 5  ;;  %v562_v61 = vshll.u32 %v1642_v46, 16  ;;  %v1688_v1 = vcombine.low %v2012_v40, %v1642_v46  ;;  %v2069_v50 = vld [vmem:[%s1935_s20 + $0x38] sm:$0xf] }
  0x2a   : > { %v547_v63 = vrot.slane %v545_v57, 4  ;;  %v550_v0 = vrot.slane %v548_v58, 5  ;;  %v523_v3 = vor.u32 %v522_v45, %v519_v39  ;;  %v561_v6 = vrot.slane %v559_v60, 4  ;;  %v2076_v60 = vld [vmem:[%s1935_s20 + $0xb0] sm:$0xf] }
  0x2b   : > { %v564_v7 = vrot.slane %v562_v61, 5  ;;  %v526_v8 = vshll.u32 %v1655_v53, 16  ;;  %v537_v9 = vor.u32 %v536_v59, %v533_v26  ;;  %v540_v11 = vshll.u32 %v1656_v62, 16  ;;  %v1853_v61 = vld [vmem:[%s1935_s20 + $0x68] ss:$8 sps:$4 sm:$0xff]  }
  0x2c   : > { %792 = vrot.lane.b32.xlu0 %v1687_v54, %s1891_s30  ;;  %v524_v10 = vrot.slane %v523_v3, 4  ;;  %v551_v12 = vor.u32 %v550_v0, %v547_v63  ;;  %v554_v13 = vshll.u32 %v1657_v4, 16  ;;  %766 = vrot.lane.b32.xlu1 %v1684_v31, %s1890_s29  ;;  %v568_v17 = vshll.u32 %v1658_v5, 16  ;;  %v236_v31 = vld [vmem:[%s1935_s20 + $0x3c] sm:$0x1] }
  0x2d   : > { %v528_v14 = vrot.slane %v526_v8, 5  ;;  %v538_v15 = vrot.slane %v537_v9, 4  ;;  %v565_v16 = vor.u32 %v564_v7, %v561_v6  ;;  %v542_v18 = vrot.slane %v540_v11, 5  ;;  %v1620_v6 = vld [vmem:[%s1935_s20 + $0xb8] sm:$0xf] }
  0x2e   : > { %v552_v20 = vrot.slane %v551_v12, 4  ;;  %v556_v21 = vrot.slane %v554_v13, 5  ;;  %v1664_v23 = vcombine.low %v1967_v42, %v1970_v48  ;;  %v570_v28 = vrot.slane %v568_v17, 5  ;;  %v1854_v7 = vld [vmem:[%s1935_s20 + $0x78] ss:$8 sps:$4 sm:$0xff]  }
  0x2f   : > { %v529_v25 = vsel %vm1980_vm2, %v524_v10, %v528_v14  ;;  %v566_v27 = vrot.slane %v565_v16, 4  ;;  %v543_v32 = vsel %vm1980_vm2, %v538_v15, %v542_v18  ;;  %v297_v35 = vshrl.u32 %v2040_v22, 16  ;;  %v2086_v12 = vld [vmem:[%s1935_s20 + $0xc0] sm:$0xf]  ;;  %v2093_v17 = vld [vmem:[%s1935_s20 + $0xc8] sm:$0xf] }
  0x30   : > { %820 = vrot.lane.b32.xlu0 %v1851_v2, %s1892_s5  ;;  %v557_v33 = vsel %vm1980_vm2, %v552_v20, %v556_v21  ;;  %v300_v36 = vshll.u32 %v2040_v22, 16  ;;  %794 = vrot.lane.b32.xlu1 %v1688_v1, %s1891_s30  ;;  %v1695_v39 = vcombine.low %v529_v25, %v543_v32  ;;  %v306_v41 = vshll.u32 %v233_v30, 16 }
  0x31   : > { %v571_v40 = vsel %vm1980_vm2, %v566_v27, %v570_v28  ;;  %v311_v43 = vshrl.u32 %v2047_v29, 16  ;;  %v299_v46 = vrot.slane %v297_v35, 4  ;;  %v314_v49 = vshll.u32 %v2047_v29, 16 }
  0x32   : > { %v1696_v45 = vcombine.low %v557_v33, %v571_v40  ;;  %v302_v47 = vrot.slane %v300_v36, 5  ;;  %v308_v51 = vrot.slane %v306_v41, 5  ;;  %v320_v53 = vshll.u32 %v234_v34, 16 }
  0x33   : > { %v313_v52 = vrot.slane %v311_v43, 4  ;;  %v325_v54 = vshrl.u32 %v2059_v37, 16  ;;  %v316_v58 = vrot.slane %v314_v49, 5  ;;  %v328_v26 = vshll.u32 %v2059_v37, 16  ;;  %v1635_v43 = vld [vmem:[%s1935_s20 + $0xb4] sm:$0x1] }
  0x34   : > { %840 = vrot.lane.b32.xlu0 %v1695_v39, %s1893_s6  ;;  %v303_v57 = vor.u32 %v302_v47, %v299_v46  ;;  %v334_v59 = vshll.u32 %v235_v44, 16  ;;  %822 = vrot.lane.b32.xlu1 %v1852_v38, %s1892_s5  ;;  %v322_v62 = vrot.slane %v320_v53, 5  ;;  %v339_v0 = vshrl.u32 %v2069_v50, 16  ;;  %v1636_v49 = vld [vmem:[%s1935_s20 + $0xbc] sm:$0x1] }
  0x35   : > { %v327_v63 = vrot.slane %v325_v54, 4  ;;  %v342_v1 = vshll.u32 %v2069_v50, 16  ;;  %v317_v3 = vor.u32 %v316_v58, %v313_v52  ;;  %v330_v4 = vrot.slane %v328_v26, 5 }
  0x36   : > { %v304_v2 = vrot.slane %v303_v57, 4  ;;  %v336_v5 = vrot.slane %v334_v59, 5  ;;  %v341_v8 = vrot.slane %v339_v0, 4  ;;  %v348_v10 = vshll.u32 %v236_v31, 16  ;;  %v1638_v57 = vld [vmem:[%s1935_s20 + $0xcc] sm:$0x1] }
  0x37   : > { %v344_v9 = vrot.slane %v342_v1, 5  ;;  %v435_v11 = vshrl.u32 %v2076_v60, 16  ;;  %v318_v14 = vrot.slane %v317_v3, 4  ;;  %v331_v15 = vor.u32 %v330_v4, %v327_v63  ;;  %v1857_v59 = vld [vmem:[%s1935_s20 + $0xf8] ss:$8 sps:$4 sm:$0xff]  }
  0x38   : > { %842 = vrot.lane.b32.xlu0 %v1696_v45, %s1893_s6  ;;  %v309_v13 = vsel %vm1980_vm2, %v304_v2, %v308_v51  ;;  %v438_v16 = vshll.u32 %v2076_v60, 16  ;;  %672 = vrot.lane.b32.xlu1 %v1853_v61, %s1886_s21  ;;  %v350_v20 = vrot.slane %v348_v10, 5  ;;  %v449_v25 = vshrl.u32 %v1620_v6, 16  ;;  %v1637_v51 = vld [vmem:[%s1935_s20 + $0xc4] sm:$0x1] }
  0x39   : > { %v345_v18 = vor.u32 %v344_v9, %v341_v8  ;;  %v437_v21 = vrot.slane %v435_v11, 4  ;;  %v323_v27 = vsel %vm1980_vm2, %v318_v14, %v322_v62  ;;  %v332_v28 = vrot.slane %v331_v15, 4  ;;  %v2117_v62 = vld [vmem:[%s1935_s20 + $0x28] sm:$0xf]  ;;  %v1644_v3 = vld [vmem:[%s1935_s20 + $0x30] sm:$0xf] }
  0x3a   : > { %v440_v30 = vrot.slane %v438_v16, 5  ;;  %v452_v32 = vshll.u32 %v1620_v6, 16  ;;  %v1673_v33 = vcombine.low %v309_v13, %v323_v27  ;;  %v451_v35 = vrot.slane %v449_v25, 4  ;;  %v2123_v8 = vld [vmem:[%s1935_s20 + $0x38] sm:$0xf] }
  0x3b   : > { %v346_v34 = vrot.slane %v345_v18, 4  ;;  %v1677_v36 = vcombine.low %v2076_v60, %v1620_v6  ;;  %v337_v38 = vsel %vm1980_vm2, %v332_v28, %v336_v5  ;;  %v463_v40 = vshrl.u32 %v2086_v12, 16  ;;  %v1858_v27 = vld [vmem:[%s1935_s20 + $0x108] ss:$8 sps:$4 sm:$0xff]  }
  0x3c   : > { %v454_v39 = vrot.slane %v452_v32, 5  ;;  %v466_v41 = vshll.u32 %v2086_v12, 16  ;;  %674 = vrot.lane.b32.xlu1 %v1854_v7, %s1886_s21  ;;  %692 = vrot.lane.b32.xlu0 %v1673_v33, %s1889_s26  ;;  %v477_v45 = vshrl.u32 %v2093_v17, 16  ;;  %v480_v46 = vshll.u32 %v2093_v17, 16 }
  0x3d   : > { %v351_v44 = vsel %vm1980_vm2, %v346_v34, %v350_v20  ;;  %v1678_v47 = vcombine.low %v2086_v12, %v2093_v17  ;;  %v465_v53 = vrot.slane %v463_v40, 4  ;;  %v441_v54 = vor.u32 %v440_v30, %v437_v21  ;;  %v1646_v17 = vld [vmem:[%s1935_s20 + $0x40] sm:$0xf]  ;;  %v1659_v34 = vld [vmem:[%s1935_s20 + $0x2c] sm:$0x1] }
  0x3e   : > { %v1674_v52 = vcombine.low %v337_v38, %v351_v44  ;;  %v468_v31 = vrot.slane %v466_v41, 5  ;;  %v479_v58 = vrot.slane %v477_v45, 4  ;;  %v482_v26 = vrot.slane %v480_v46, 5  ;;  %v1661_v45 = vld [vmem:[%s1935_s20 + $0x3c] sm:$0x1] }
  0x3f   : > { %v444_v60 = vshll.u32 %v1635_v43, 16  ;;  %v455_v61 = vor.u32 %v454_v39, %v451_v35  ;;  %v442_v63 = vrot.slane %v441_v54, 4  ;;  %v458_v0 = vshll.u32 %v1636_v49, 16  ;;  %v1660_v39 = vld [vmem:[%s1935_s20 + $0x34] sm:$0x1] }
  0x40   : > { %v469_v1 = vor.u32 %v468_v31, %v465_v53  ;;  %v472_v2 = vshll.u32 %v1637_v51, 16  ;;  %694 = vrot.lane.b32.xlu1 %v1674_v52, %s1889_s26  ;;  %720 = vrot.lane.b32.xlu0 %v1677_v36, %s1887_s22  ;;  %v483_v6 = vor.u32 %v482_v26, %v479_v58  ;;  %v486_v7 = vshll.u32 %v1638_v57, 16  ;;  %v1662_v52 = vld [vmem:[%s1935_s20 + $0x44] sm:$0x1] }
  0x41   : > { %v446_v4 = vrot.slane %v444_v60, 5  ;;  %v456_v5 = vrot.slane %v455_v61, 4  ;;  %v460_v9 = vrot.slane %v458_v0, 5  ;;  %v573_v12 = vshrl.u32 %v2117_v62, 16 }
  0x42   : > { %v470_v10 = vrot.slane %v469_v1, 4  ;;  %v474_v11 = vrot.slane %v472_v2, 5  ;;  %v484_v14 = vrot.slane %v483_v6, 4  ;;  %v488_v15 = vrot.slane %v486_v7, 5  ;;  %v1861_v1 = vld [vmem:[%s1935_s20 + $0x70] ss:$8 sps:$4 sm:$0xff]  }
  0x43   : > { %v447_v13 = vsel %vm1980_vm2, %v442_v63, %v446_v4  ;;  %v576_v16 = vshll.u32 %v2117_v62, 16  ;;  %v461_v18 = vsel %vm1980_vm2, %v456_v5, %v460_v9  ;;  %v575_v21 = vrot.slane %v573_v12, 4  ;;  %v1868_v6 = vld [vmem:[%s2516_s1 + $0x10] ss:$0 sps:$4 sm:$0x33]  }
  0x44   : > { %v475_v20 = vsel %vm1980_vm2, %v470_v10, %v474_v11  ;;  %v587_v25 = vshrl.u32 %v1644_v3, 16  ;;  %722 = vrot.lane.b32.xlu1 %v1678_v47, %s1887_s22  ;;  %748 = vrot.lane.b32.xlu0 %v1857_v59, %s1888_s23  ;;  %v1685_v28 = vcombine.low %v447_v13, %v461_v18  ;;  %v489_v30 = vsel %vm1980_vm2, %v484_v14, %v488_v15  ;;  %v1310_v12 = vld [vmem:[%s2517_s2] sm:$0x3] }
  0x45   : > { %v578_v32 = vrot.slane %v576_v16, 5  ;;  %v590_v33 = vshll.u32 %v1644_v3, 16  ;;  %v1686_v35 = vcombine.low %v475_v20, %v489_v30  ;;  %v601_v38 = vshrl.u32 %v2123_v8, 16  ;;  %v1862_v14 = vld [vmem:[%s1935_s20 + $0x80] ss:$8 sps:$4 sm:$0xff]   ;;  %1809 = vmatprep.subr.msk.bf16.mxu0 %vm953_vm4, %v1868_v6  ;;  %1810 = vmatprep.subr.msk.bf16.mxu1 %vm953_vm4, %v1310_v12 }
  0x46   : > { %v589_v36 = vrot.slane %v587_v25, 4  ;;  %v604_v41 = vshll.u32 %v2123_v8, 16  ;;  %v615_v43 = vshrl.u32 %v1646_v17, 16  ;;  %v618_v44 = vshll.u32 %v1646_v17, 16  ;;  %v1871_v25 = vld [vmem:[%s1935_s20 + $0xe8] ss:$8 sps:$4 sm:$0xff]  }
  0x47   : > { %v592_v40 = vrot.slane %v590_v33, 5  ;;  %v1689_v46 = vcombine.low %v2117_v62, %v1644_v3  ;;  %v603_v47 = vrot.slane %v601_v38, 4  ;;  %v579_v49 = vor.u32 %v578_v32, %v575_v21  ;;  %v1873_v30 = vld [vmem:[%s1935_s20 + $0x108] ss:$8 sps:$4 sm:$0xff]  }
  0x48   : > { %v582_v51 = vshll.u32 %v1659_v34, 16  ;;  %750 = vrot.lane.b32.xlu1 %v1858_v27, %s1888_s23  ;;  %768 = vrot.lane.b32.xlu0 %v1685_v28, %s1890_s29  ;;  %v606_v53 = vrot.slane %v604_v41, 5  ;;  %v617_v31 = vrot.slane %v615_v43, 4  ;;  %v620_v54 = vrot.slane %v618_v44, 5  ;;  %v1872_v27 = vld [vmem:[%s1935_s20 + $0xf8] ss:$8 sps:$4 sm:$0xff]  }
  0x49   : > { %v593_v57 = vor.u32 %v592_v40, %v589_v36  ;;  %v580_v58 = vrot.slane %v579_v49, 4  ;;  %v596_v59 = vshll.u32 %v1660_v39, 16  ;;  %v610_v60 = vshll.u32 %v1661_v45, 16  ;;  %s1895_s23 = smov 0.0  }
  0x4a   : > { %v584_v26 = vrot.slane %v582_v51, 5  ;;  %v607_v63 = vor.u32 %v606_v53, %v603_v47  ;;  %v621_v62 = vor.u32 %v620_v54, %v617_v31  ;;  %v624_v0 = vshll.u32 %v1662_v52, 16 }
  0x4b   : > { %v594_v61 = vrot.slane %v593_v57, 4  ;;  %v598_v2 = vrot.slane %v596_v59, 5  ;;  %v1690_v3 = vcombine.low %v2123_v8, %v1646_v17  ;;  %v612_v5 = vrot.slane %v610_v60, 5  ;;  %v1870_v8 = vld [vmem:[%s1935_s20 + $0xd8] ss:$8 sps:$4 sm:$0xff]  }
  0x4c   : > { %770 = vrot.lane.b32.xlu1 %v1686_v35, %s1890_s29  ;;  %796 = vrot.lane.b32.xlu0 %v1689_v46, %s1891_s30  ;;  %v608_v4 = vrot.slane %v607_v63, 4  ;;  %v585_v7 = vsel %vm1980_vm2, %v580_v58, %v584_v26  ;;  %v622_v10 = vrot.slane %v621_v62, 4  ;;  %v626_v11 = vrot.slane %v624_v0, 5 }
  0x4d   : > { %v599_v9 = vsel %vm1980_vm2, %v594_v61, %v598_v2  ;;  %v1665_v13 = vcombine.low %v2040_v22, %v2047_v29  ;;  %1801 = vmatprep.mubr.msk.bf16.mxu1 %vm848_vm3, %v1870_v8  ;;  %v955_v16 = vsel %vm953_vm4, %v1868_v6, 0  ;;  %v1666_v17 = vcombine.low %v2059_v37, %v2069_v50 }
  0x4e   : > { %v1697_v15 = vcombine.low %v585_v7, %v599_v9  ;;  %v1344_v18 = vsel %vm953_vm4, %v1310_v12, 0  ;;  %v613_v20 = vsel %vm1980_vm2, %v608_v4, %v612_v5  ;;  %v627_v21 = vsel %vm1980_vm2, %v622_v10, %v626_v11  ;;  %1790 = vmatpush3.bf16.msra.mxu0 %v955_v16  ;;  %vm2417_vm2 = vmand %vm1115_vm14, %vm1255_vm0 }
  0x4f   : > { %1800 = vmatpush3.bf16.msra.mxu1 %v1344_v18  ;;  %v1698_v28 = vcombine.low %v613_v20, %v627_v21 }
  0x50   : > { %798 = vrot.lane.b32.xlu1 %v1690_v3, %s1891_s30  ;;  %824 = vrot.lane.b32.xlu0 %v1861_v1, %s1892_s5 }
  0x52   : > { %1802 = vmatmul.mubr.msk.bf16.vlgmr.msra.gmra.mrb[0].mxu1 %vm848_vm3, %v1871_v25 }
  0x53   : > { %1805 = vmatprep.mubr.msk.bf16.mxu1 %vm848_vm3, %v1872_v27 }
  0x54   : > { %826 = vrot.lane.b32.xlu1 %v1862_v14, %s1892_s5  ;;  %844 = vrot.lane.b32.xlu0 %v1697_v15, %s1893_s6 }
  0x58   : > { %846 = vrot.lane.b32.xlu1 %v1698_v28, %s1893_s6 }
  0x5a   : > { %1806 = vmatmul.mubr.msk.bf16.gmra.mrb[4].mxu1 %vm848_vm3, %v1873_v30 }
  0x84   : > { %v669_v56 = vpop.permute.xlu0 %668 }
  0x85   : > { %v851_v41 = vsel %vm848_vm3, %v1663_v55, %v669_v56 }
  0x87   : > { %v719_v33 = vpop.permute.xlu1 %718 }
  0x88   : > { %v671_v32 = vpop.permute.xlu0 %670 }
  0x89   : > { %v854_v44 = vsel %vm848_vm3, %v1664_v23, %v671_v32 }
  0x8b   : > { %v747_v35 = vpop.permute.xlu1 %746 }
  0x8c   : > { %v717_v34 = vpop.permute.xlu0 %716 }
  0x90   : > { %v745_v36 = vpop.permute.xlu0 %744 }
  0x96   : > { %v689_v38 = vpop.permute.xlu1 %688 }
  0x97   : > { %v863_v43 = vsel %vm861_vm5, %v851_v41, %v689_v38 }
  0x98   : > { %v872_v49 = vsel %vm870_vm6, %v863_v43, %v717_v34 }
  0x99   : > { %v881_v55 = vsel %vm879_vm7, %v872_v49, %v745_v36 }
  0x9a   : > { %v765_v39 = vpop.permute.xlu0 %764  ;;  %v691_v40 = vpop.permute.xlu1 %690 }
  0x9b   : > { %v865_v46 = vsel %vm861_vm5, %v854_v44, %v691_v40  ;;  %v890_v42 = vsel %vm888_vm8, %v881_v55, %v765_v39 }
  0x9c   : > { %v874_v19 = vsel %vm870_vm6, %v865_v46, %v719_v33 }
  0x9d   : > { %v883_v48 = vsel %vm879_vm7, %v874_v19, %v747_v35 }
  0x9e   : > { %v793_v45 = vpop.permute.xlu0 %792  ;;  %v767_v47 = vpop.permute.xlu1 %766 }
  0x9f   : > { %v899_v23 = vsel %vm897_vm9, %v890_v42, %v793_v45  ;;  %v892_v57 = vsel %vm888_vm8, %v883_v48, %v767_v47 }
  0xa2   : > { %v821_v24 = vpop.permute.xlu0 %820  ;;  %v795_v51 = vpop.permute.xlu1 %794 }
  0xa3   : > { %v908_v52 = vsel %vm906_vm10, %v899_v23, %v821_v24  ;;  %v901_v58 = vsel %vm897_vm9, %v892_v57, %v795_v51 }
  0xa6   : > { %v841_v53 = vpop.permute.xlu0 %840  ;;  %v823_v31 = vpop.permute.xlu1 %822 }
  0xa7   : > { %v917_v54 = vsel %vm915_vm11, %v908_v52, %v841_v53  ;;  %v910_v26 = vsel %vm906_vm10, %v901_v58, %v823_v31 }
  0xa8   : > { %1791 = vmatprep.mubr.msk.bf16.mxu0 %vm944_vm12, %v917_v54 }
  0xaa   : > { %v843_v59 = vpop.permute.xlu0 %842  ;;  %v673_v60 = vpop.permute.xlu1 %672 }
  0xab   : > { %v919_v61 = vsel %vm915_vm11, %v910_v26, %v843_v59  ;;  %v857_v9 = vsel %vm848_vm3, %v1665_v13, %v673_v60 }
  0xac   : > { %1792 = vmatmul.mubr.msk.bf16.vlgmr.msra.gmra.mrb[0].mxu0 %vm944_vm12, %v919_v61 }
  0xae   : > { %v675_v63 = vpop.permute.xlu1 %674  ;;  %v693_v62 = vpop.permute.xlu0 %692 }
  0xaf   : > { %v867_v10 = vsel %vm861_vm5, %v857_v9, %v693_v62  ;;  %v860_v15 = vsel %vm848_vm3, %v1666_v17, %v675_v63 }
  0xb2   : > { %v695_v0 = vpop.permute.xlu1 %694  ;;  %v721_v1 = vpop.permute.xlu0 %720 }
  0xb3   : > { %v876_v11 = vsel %vm870_vm6, %v867_v10, %v721_v1  ;;  %v869_v18 = vsel %vm861_vm5, %v860_v15, %v695_v0 }
  0xb6   : > { %v723_v2 = vpop.permute.xlu1 %722  ;;  %v749_v3 = vpop.permute.xlu0 %748 }
  0xb7   : > { %v885_v14 = vsel %vm879_vm7, %v876_v11, %v749_v3  ;;  %v878_v29 = vsel %vm870_vm6, %v869_v18, %v723_v2 }
  0xba   : > { %v751_v4 = vpop.permute.xlu1 %750  ;;  %v769_v5 = vpop.permute.xlu0 %768 }
  0xbb   : > { %v894_v16 = vsel %vm888_vm8, %v885_v14, %v769_v5  ;;  %v887_v25 = vsel %vm879_vm7, %v878_v29, %v751_v4 }
  0xbe   : > { %v771_v6 = vpop.permute.xlu1 %770  ;;  %v797_v7 = vpop.permute.xlu0 %796 }
  0xbf   : > { %v903_v22 = vsel %vm897_vm9, %v894_v16, %v797_v7  ;;  %v896_v37 = vsel %vm888_vm8, %v887_v25, %v771_v6 }
  0xc2   : > { %v799_v12 = vpop.permute.xlu1 %798  ;;  %v825_v8 = vpop.permute.xlu0 %824 }
  0xc3   : > { %v912_v13 = vsel %vm906_vm10, %v903_v22, %v825_v8  ;;  %v905_v50 = vsel %vm897_vm9, %v896_v37, %v799_v12 }
  0xc6   : > { %v827_v20 = vpop.permute.xlu1 %826  ;;  %v845_v21 = vpop.permute.xlu0 %844 }
  0xc7   : > { %v921_v27 = vsel %vm915_vm11, %v912_v13, %v845_v21  ;;  %v914_v17 = vsel %vm906_vm10, %v905_v50, %v827_v20 }
  0xc8   : > { %1795 = vmatprep.mubr.msk.bf16.mxu0 %vm944_vm12, %v921_v27 }
  0xca   : > { %v847_v28 = vpop.permute.xlu1 %846 }
  0xcb   : > { %v923_v30 = vsel %vm915_vm11, %v914_v17, %v847_v28 }
  0xcc   : > { %1796 = vmatmul.mubr.msk.bf16.gmra.mrb[4].mxu0 %vm944_vm12, %v923_v30 }
 0x125   : > { %v2232_v56 = vpop.f32.mrb[0].mxu1 }
 0x126   : > { %v2234_v32 = vpop.f32.mrb[1].mxu1  ;;  %v1438_v33 = vmul.f32 %v2232_v56, %v2232_v56  ;;  %v1414_v38 = vsel %vm861_vm5, %v2232_v56, 0.0 }
 0x127   : > { %v1411_v34 = vsel %vm861_vm5, %v2234_v32, 0.0  ;;  %v1436_v35 = vmul.f32 %v2234_v32, %v2234_v32  ;;  %v2242_v36 = vpop.f32.mrb[2].mxu1 }
 0x128   : > { %v2246_v39 = vpop.f32.mrb[3].mxu1  ;;  %v1439_v41 = vmul.f32 %v2242_v36, %v2242_v36  ;;  %v1447_v49 = vsel %vm861_vm5, %v1438_v33, 0.0  ;;  %v1416_v19 = vsel %vm861_vm5, %v2242_v36, 0.0 }
 0x129   : > { %v1444_v40 = vsel %vm861_vm5, %v1436_v35, 0.0  ;;  %v1412_v43 = vsel %vm861_vm5, %v2246_v39, 0.0  ;;  %v1437_v44 = vmul.f32 %v2246_v39, %v2246_v39 }
 0x12a   : > { %v1413_v46 = vadd.f32 %v1412_v43, %v1411_v34  ;;  %v1449_v52 = vsel %vm861_vm5, %v1439_v41, 0.0 }
 0x12b   : > { %v1445_v24 = vsel %vm861_vm5, %v1437_v44, 0.0 }
 0x12c   : > { %v1415_v42 = vadd.f32 %v1414_v38, %v1413_v46  ;;  %v1446_v48 = vadd.f32 %v1445_v24, %v1444_v40 }
 0x12d   : > { %v2255_v45 = vpop.f32.mrb[4].mxu1 }
 0x12e   : > { %v2257_v47 = vpop.f32.mrb[5].mxu1  ;;  %v1448_v54 = vadd.f32 %v1447_v49, %v1446_v48  ;;  %v1417_v57 = vadd.f32 %v1416_v19, %v1415_v42  ;;  %v1442_v58 = vmul.f32 %v2255_v45, %v2255_v45  ;;  %v1422_v63 = vsel %vm861_vm5, %v2255_v45, 0.0 }
 0x12f   : > { %v1440_v55 = vmul.f32 %v2257_v47, %v2257_v47  ;;  %v2265_v51 = vpop.f32.mrb[6].mxu1  ;;  %v1418_v53 = vsel %vm861_vm5, %v2257_v47, 0.0 }
 0x130   : > { %v2267_v23 = vpop.f32.mrb[7].mxu1  ;;  %v1419_v60 = vadd.f32 %v1418_v53, %v1417_v57  ;;  %v1450_v61 = vadd.f32 %v1449_v52, %v1448_v54  ;;  %v1443_v62 = vmul.f32 %v2265_v51, %v2265_v51  ;;  %v1424_v3 = vsel %vm861_vm5, %v2265_v51, 0.0 }
 0x131   : > { %v1441_v31 = vmul.f32 %v2267_v23, %v2267_v23  ;;  %v1451_v26 = vsel %vm861_vm5, %v1440_v55, 0.0  ;;  %v1420_v59 = vsel %vm861_vm5, %v2267_v23, 0.0  ;;  %v1455_v4 = vsel %vm861_vm5, %v1442_v58, 0.0 }
 0x132   : > { %v1452_v1 = vadd.f32 %v1451_v26, %v1450_v61  ;;  %v1421_v2 = vadd.f32 %v1420_v59, %v1419_v60  ;;  %v1457_v7 = vsel %vm861_vm5, %v1443_v62, 0.0 }
 0x133   : > { %v1453_v0 = vsel %vm861_vm5, %v1441_v31, 0.0 }
 0x134   : > { %v1454_v5 = vadd.f32 %v1453_v0, %v1452_v1  ;;  %v1423_v6 = vadd.f32 %v1422_v63, %v1421_v2 }
 0x136   : > { %v1425_v9 = vadd.f32 %v1424_v3, %v1423_v6  ;;  %v1456_v10 = vadd.f32 %v1455_v4, %v1454_v5 }
 0x138   : > { %v1458_v11 = vadd.f32 %v1457_v7, %v1456_v10 }
 0x17f   : > { %v2288_v12 = vpop.f32.mrb[0].mxu0 }
 0x180   : > { %v2290_v8 = vpop.f32.mrb[1].mxu0  ;;  %v1049_v18 = vmul.f32 %v2288_v12, %v2288_v12  ;;  %v1025_v21 = vsel %vm861_vm5, %v2288_v12, 0.0 }
 0x181   : > { %v1047_v14 = vmul.f32 %v2290_v8, %v2290_v8  ;;  %v2294_v15 = vpop.f32.mrb[2].mxu0  ;;  %v1022_v22 = vsel %vm861_vm5, %v2290_v8, 0.0 }
 0x182   : > { %v2296_v16 = vpop.f32.mrb[3].mxu0  ;;  %v1050_v27 = vmul.f32 %v2294_v15, %v2294_v15  ;;  %v1058_v28 = vsel %vm861_vm5, %v1049_v18, 0.0  ;;  %v1027_v30 = vsel %vm861_vm5, %v2294_v15, 0.0 }
 0x183   : > { %v1023_v29 = vsel %vm861_vm5, %v2296_v16, 0.0  ;;  %v1048_v13 = vmul.f32 %v2296_v16, %v2296_v16  ;;  %v1055_v25 = vsel %vm861_vm5, %v1047_v14, 0.0 }
 0x184   : > { %v1024_v20 = vadd.f32 %v1023_v29, %v1022_v22  ;;  %v1060_v35 = vsel %vm861_vm5, %v1050_v27, 0.0 }
 0x185   : > { %v1056_v37 = vsel %vm861_vm5, %v1048_v13, 0.0  ;;  %v1894_v13 = vmov 0  }
 0x186   : > { %v1026_v50 = vadd.f32 %v1025_v21, %v1024_v20  ;;  %v1057_v17 = vadd.f32 %v1056_v37, %v1055_v25  ;;  %1114 = vst.msk [vmem:[%s2348_s14] sm:$0xf] %vm1113_vm13, %v1894_v13  ;;  %1117 = vst.msk [vmem:[%s2348_s14 + $0x8] sm:$0xf] %vm1113_vm13, %v1894_v13 }
 0x187   : > { %1116 = vst.msk [vmem:[%s2348_s14 + $0x4] sm:$0x1] %vm1115_vm14, %v1894_v13  ;;  %1118 = vst.msk [vmem:[%s2348_s14 + $0xc] sm:$0x1] %vm1115_vm14, %v1894_v13 }
 0x188   : > { %v1059_v33 = vadd.f32 %v1058_v28, %v1057_v17  ;;  %v1028_v34 = vadd.f32 %v1027_v30, %v1026_v50  ;;  %1119 = vst.msk [vmem:[%s2348_s14 + $0x10] sm:$0xf] %vm1113_vm13, %v1894_v13  ;;  %1121 = vst.msk [vmem:[%s2348_s14 + $0x18] sm:$0xf] %vm1113_vm13, %v1894_v13 }
 0x189   : > { %1120 = vst.msk [vmem:[%s2348_s14 + $0x14] sm:$0x1] %vm1115_vm14, %v1894_v13  ;;  %1122 = vst.msk [vmem:[%s2348_s14 + $0x1c] sm:$0x1] %vm1115_vm14, %v1894_v13 }
 0x18a   : > { %v1061_v38 = vadd.f32 %v1060_v35, %v1059_v33  ;;  %1123 = vst.msk [vmem:[%s2348_s14 + $0x20] sm:$0xf] %vm1113_vm13, %v1894_v13  ;;  %1125 = vst.msk [vmem:[%s2348_s14 + $0x28] sm:$0xf] %vm1113_vm13, %v1894_v13 }
 0x18b   : > { %1124 = vst.msk [vmem:[%s2348_s14 + $0x24] sm:$0x1] %vm1115_vm14, %v1894_v13  ;;  %1126 = vst.msk [vmem:[%s2348_s14 + $0x2c] sm:$0x1] %vm1115_vm14, %v1894_v13 }
 0x18c   : > { %1127 = vst.msk [vmem:[%s2348_s14 + $0x30] sm:$0xf] %vm1113_vm13, %v1894_v13  ;;  %1129 = vst.msk [vmem:[%s2348_s14 + $0x38] sm:$0xf] %vm1113_vm13, %v1894_v13 }
 0x18d   : > { %1128 = vst.msk [vmem:[%s2348_s14 + $0x34] sm:$0x1] %vm1115_vm14, %v1894_v13  ;;  %1130 = vst.msk [vmem:[%s2348_s14 + $0x3c] sm:$0x1] %vm1115_vm14, %v1894_v13 }
 0x18e   : > { %1131 = vst.msk [vmem:[%s2348_s14 + $0x40] sm:$0xf] %vm1113_vm13, %v1894_v13  ;;  %1133 = vst.msk [vmem:[%s2348_s14 + $0x48] sm:$0xf] %vm1113_vm13, %v1894_v13 }
 0x18f   : > { %1132 = vst.msk [vmem:[%s2348_s14 + $0x44] sm:$0x1] %vm1115_vm14, %v1894_v13  ;;  %1134 = vst.msk [vmem:[%s2348_s14 + $0x4c] sm:$0x1] %vm1115_vm14, %v1894_v13 }
 0x19f   : > { %v2316_v40 = vpop.f32.mrb[4].mxu0 }
 0x1a0   : > { %v2318_v41 = vpop.f32.mrb[5].mxu0  ;;  %v1053_v24 = vmul.f32 %v2316_v40, %v2316_v40  ;;  %v1033_v31 = vsel %vm861_vm5, %v2316_v40, 0.0 }
 0x1a1   : > { %v1029_v43 = vsel %vm861_vm5, %v2318_v41, 0.0  ;;  %v1051_v44 = vmul.f32 %v2318_v41, %v2318_v41  ;;  %v2324_v46 = vpop.f32.mrb[6].mxu0 }
 0x1a2   : > { %v1030_v49 = vadd.f32 %v1029_v43, %v1028_v34  ;;  %v2326_v19 = vpop.f32.mrb[7].mxu0  ;;  %v1054_v54 = vmul.f32 %v2324_v46, %v2324_v46  ;;  %v1035_v59 = vsel %vm861_vm5, %v2324_v46, 0.0  ;;  %v1066_v60 = vsel %vm861_vm5, %v1053_v24, 0.0 }
 0x1a3   : > { %v1062_v55 = vsel %vm861_vm5, %v1051_v44, 0.0  ;;  %v1031_v42 = vsel %vm861_vm5, %v2326_v19, 0.0  ;;  %v1052_v48 = vmul.f32 %v2326_v19, %v2326_v19 }
 0x1a4   : > { %v1063_v52 = vadd.f32 %v1062_v55, %v1061_v38  ;;  %v1032_v53 = vadd.f32 %v1031_v42, %v1030_v49  ;;  %v1068_v62 = vsel %vm861_vm5, %v1054_v54, 0.0 }
 0x1a5   : > { %v1064_v57 = vsel %vm861_vm5, %v1052_v48, 0.0 }
 0x1a6   : > { %v1065_v58 = vadd.f32 %v1064_v57, %v1063_v52  ;;  %v1034_v26 = vadd.f32 %v1033_v31, %v1032_v53 }
 0x1a8   : > { %v1036_v61 = vadd.f32 %v1035_v59, %v1034_v26  ;;  %v1067_v63 = vadd.f32 %v1066_v60, %v1065_v58 }
 0x1aa   : > { %1037 = vadd.xlane.f32.xlu0 %v1036_v61  ;;  %v1069_v0 = vadd.f32 %v1068_v62, %v1067_v63 }
 0x1ac   : > { %1070 = vadd.xlane.f32.xlu1 %v1069_v0 }
 0x1ae   : > { %1426 = vadd.xlane.f32.xlu0 %v1425_v9 }
 0x1b2   : > { %1459 = vadd.xlane.f32.xlu0 %v1458_v11 }
 0x237   : > { %v1038_v1 = vpop.xlane.xlu0 %1037 }
 0x238   : > { %v1039_v2 = vrot.slane %v1038_v1, 4 }
 0x239   : > { %v1071_v3 = vpop.xlane.xlu1 %1070 }
 0x23a   : > { %v1040_v4 = vadd.f32 %v1039_v2, %v1038_v1  ;;  %v1072_v5 = vrot.slane %v1071_v3, 4 }
 0x23b   : > { %v1427_v20 = vpop.xlane.xlu0 %1426 }
 0x23c   : > { %v1041_v6 = vrot.slane %v1040_v4, 2  ;;  %v1073_v7 = vadd.f32 %v1072_v5, %v1071_v3  ;;  %v1428_v25 = vrot.slane %v1427_v20, 4 }
 0x23e   : > { %v1074_v10 = vrot.slane %v1073_v7, 2  ;;  %v1042_v14 = vadd.f32 %v1041_v6, %v1040_v4  ;;  %v1429_v43 = vadd.f32 %v1428_v25, %v1427_v20 }
 0x23f   : > { %v1460_v21 = vpop.xlane.xlu0 %1459 }
 0x240   : > { %v1075_v18 = vadd.f32 %v1074_v10, %v1073_v7  ;;  %v1043_v22 = vrot.slane %v1042_v14, 1  ;;  %v1461_v27 = vrot.slane %v1460_v21, 4 }
 0x242   : > { %v1044_v9 = vadd.f32 %v1043_v22, %v1042_v14  ;;  %v1076_v11 = vrot.slane %v1075_v18, 1  ;;  %v1462_v44 = vadd.f32 %v1461_v27, %v1460_v21 }
 0x244   : > { %1813 = vpush %v1044_v9  ;;  %v1077_v29 = vadd.f32 %v1076_v11, %v1075_v18 }
 0x246   : > { %1815 = vpush %v1077_v29 }
 0x275   : > { %s1814_s17 = spop %1813 }
 0x276   : > { %s1046_s18 = smul.f32 0.001953125, %s1814_s17 }
 0x277   : > { %s1816_s19 = spop %1815 }
 0x278   : > { %s1080_s20 = smul.f32 %s1046_s18, %s1046_s18  ;;  %v1082_v37 = vstv %s1046_s18 }
 0x279   : > { %s1079_s21 = smul.f32 0.001953125, %s1816_s19  ;;  %v1083_v50 = vsub.f32 %v2290_v8, %v1082_v37  ;;  %v1084_v17 = vsub.f32 %v2296_v16, %v1082_v37  ;;  %v1085_v28 = vsub.f32 %v2288_v12, %v1082_v37  ;;  %v1086_v30 = vsub.f32 %v2294_v15, %v1082_v37 }
 0x27a   : > { %v1087_v33 = vsub.f32 %v2318_v41, %v1082_v37  ;;  %v1088_v34 = vsub.f32 %v2326_v19, %v1082_v37  ;;  %v1089_v35 = vsub.f32 %v2316_v40, %v1082_v37  ;;  %v1090_v38 = vsub.f32 %v2324_v46, %v1082_v37 }
 0x27b   : > { %s1081_s22 = ssub.f32 %s1079_s21, %s1080_s20  ;;  %v1430_v8 = vrot.slane %v1429_v43, 2  ;;  %v1463_v16 = vrot.slane %v1462_v44, 2 }
 0x27d   : > { %s1091_s24 = smax.f32 %s1895_s23, %s1081_s22  ;;  %v1431_v15 = vadd.f32 %v1430_v8, %v1429_v43  ;;  %v1464_v49 = vadd.f32 %v1463_v16, %v1462_v44 }
 0x27e   : > { %s1092_s25 = sadd.f32 1e-05, %s1091_s24 }
 0x27f   : > { %v1432_v41 = vrot.slane %v1431_v15, 1  ;;  %v1465_v24 = vrot.slane %v1464_v49, 1 }
 0x280   : > { %v1093_v12 = vstv %s1092_s25 }
 0x281   : > { %1874 = vrsqrt.f32 %v1093_v12  ;;  %v1433_v55 = vadd.f32 %v1432_v41, %v1431_v15  ;;  %v1466_v40 = vadd.f32 %v1465_v24, %v1464_v49  ;;  %v1718_v15 = vld [vmem:[%s2348_s14 + $0x10] sm:$0xf]  ;;  %v1720_v49 = vld [vmem:[%s2348_s14 + $0x14] sm:$0x1] }
 0x28b   : > { %v1875_v19 = vpop.eup %1874 }
 0x28c   : > { %1817 = vpush %v1875_v19 }
 0x28d   : > { %1819 = vpush %v1433_v55 }
 0x28e   : > { %1821 = vpush %v1466_v40  ;;  %v1722_v40 = vld [vmem:[%s2348_s14 + $0x18] sm:$0xf] }
 0x2bd   : > { %s1818_s26 = spop %1817 }
 0x2be   : > { %v1096_v46 = vstv %s1818_s26  ;;  %s1820_s27 = spop %1819 }
 0x2bf   : > { %v1097_v42 = vmul.f32 %v1096_v46, %v1083_v50  ;;  %v1098_v48 = vmul.f32 %v1096_v46, %v1084_v17  ;;  %v1099_v52 = vmul.f32 %v1096_v46, %v1085_v28  ;;  %v1100_v53 = vmul.f32 %v1096_v46, %v1086_v30  ;;  %s2399_s28 = smul.f32 0.001953125, %s1820_s27  ;;  %s1822_s29 = spop %1821  ;;  %v1714_v17 = vld [vmem:[%s2348_s14 + $0x8] sm:$0xf] }
 0x2c0   : > { %v1101_v31 = vmul.f32 %v1096_v46, %v1087_v33  ;;  %v1102_v54 = vmul.f32 %v1096_v46, %v1088_v34  ;;  %v1103_v57 = vmul.f32 %v1096_v46, %v1089_v35  ;;  %v1104_v58 = vmul.f32 %v1096_v46, %v1090_v38  ;;  %s1468_s5 = smul.f32 0.001953125, %s1822_s29  ;;  %v1716_v38 = vld [vmem:[%s2348_s14 + $0xc] sm:$0x1]  ;;  %v1724_v46 = vld [vmem:[%s2348_s14 + $0x1c] sm:$0x1] }
 0x2c1   : > { %v1105_v26 = vmax.f32 %v1097_v42, 0.0  ;;  %v1106_v59 = vmax.f32 %v1098_v48, 0.0  ;;  %v1107_v60 = vmax.f32 %v1099_v52, 0.0  ;;  %v1108_v61 = vmax.f32 %v1100_v53, 0.0  ;;  %s1469_s30 = smul.f32 %s2399_s28, %s2399_s28  ;;  %v1726_v42 = vld [vmem:[%s2348_s14 + $0x20] sm:$0xf] }
 0x2c2   : > { %v1109_v63 = vmax.f32 %v1101_v31, 0.0  ;;  %v1110_v62 = vmax.f32 %v1102_v54, 0.0  ;;  %v1111_v0 = vmax.f32 %v1103_v57, 0.0  ;;  %v1112_v1 = vmax.f32 %v1104_v58, 0.0  ;;  %v1728_v54 = vld [vmem:[%s2348_s14 + $0x24] sm:$0x1] }
 0x2c3   : > { %v1765_v2 = vpack.c.bf16 %v1105_v26, %v1105_v26  ;;  %v1766_v3 = vpack.c.bf16 %v1106_v59, %v1106_v59  ;;  %v1767_v4 = vpack.c.bf16 %v1107_v60, %v1107_v60  ;;  %v1768_v5 = vpack.c.bf16 %v1108_v61, %v1108_v61  ;;  %s1470_s6 = ssub.f32 %s1468_s5, %s1469_s30  ;;  %v1730_v60 = vld [vmem:[%s2348_s14 + $0x28] sm:$0xf]  ;;  %v1732_v61 = vld [vmem:[%s2348_s14 + $0x2c] sm:$0x1] }
 0x2c4   : > { %v1769_v6 = vpack.c.bf16 %v1109_v63, %v1109_v63  ;;  %v1770_v7 = vpack.c.bf16 %v1110_v62, %v1110_v62  ;;  %v2401_v10 = vpack.c.bf16 %v1111_v0, %v1111_v0  ;;  %v2403_v14 = vpack.c.bf16 %v1112_v1, %v1112_v1 }
 0x2c5   : > { %v1168_v18 = vshrl.u32 %v1765_v2, 16  ;;  %v1171_v22 = vshll.u32 %v1765_v2, 16  ;;  %v1176_v9 = vshrl.u32 %v1766_v3, 16  ;;  %v1179_v11 = vshll.u32 %v1766_v3, 16  ;;  %s2438_s7 = smax.f32 %s1895_s23, %s1470_s6  ;;  %v1734_v2 = vld [vmem:[%s2348_s14 + $0x30] sm:$0xf] }
 0x2c6   : > { %v1184_v29 = vshrl.u32 %v1767_v4, 16  ;;  %v1187_v13 = vshll.u32 %v1767_v4, 16  ;;  %v1192_v20 = vshrl.u32 %v1768_v5, 16  ;;  %v1195_v21 = vshll.u32 %v1768_v5, 16  ;;  %v1736_v3 = vld [vmem:[%s2348_s14 + $0x34] sm:$0x1] }
 0x2c7   : > { %v1170_v25 = vrot.slane %v1168_v18, 7  ;;  %v1178_v27 = vrot.slane %v1176_v9, 7  ;;  %v1200_v37 = vshrl.u32 %v1769_v6, 16  ;;  %v1203_v50 = vshll.u32 %v1769_v6, 16  ;;  %s1481_s8 = sadd.f32 1e-05, %s2438_s7 }
 0x2c8   : > { %v1186_v28 = vrot.slane %v1184_v29, 7  ;;  %v1194_v30 = vrot.slane %v1192_v20, 7  ;;  %v1208_v33 = vshrl.u32 %v1770_v7, 16  ;;  %v1211_v34 = vshll.u32 %v1770_v7, 16  ;;  %v1742_v29 = vld [vmem:[%s2348_s14 + $0x40] sm:$0xf] }
 0x2c9   : > { %v1173_v43 = vor.u32 %v1171_v22, %v1170_v25  ;;  %v1174_v44 = vrot.slane %v1170_v25, 4  ;;  %v1181_v8 = vor.u32 %v1179_v11, %v1178_v27  ;;  %v1182_v16 = vrot.slane %v1178_v27, 4 }
 0x2ca   : > { %v1189_v41 = vor.u32 %v1187_v13, %v1186_v28  ;;  %v1190_v24 = vrot.slane %v1186_v28, 4  ;;  %v1197_v19 = vor.u32 %v1195_v21, %v1194_v30  ;;  %v1198_v55 = vrot.slane %v1194_v30, 4  ;;  %v1744_v13 = vld [vmem:[%s2348_s14 + $0x44] sm:$0x1] }
 0x2cb   : > { %v1202_v48 = vrot.slane %v1200_v37, 7  ;;  %v1210_v52 = vrot.slane %v1208_v33, 7  ;;  %v1216_v53 = vshrl.u32 %v2401_v10, 16  ;;  %v1219_v31 = vshll.u32 %v2401_v10, 16  ;;  %v1738_v10 = vld [vmem:[%s2348_s14 + $0x38] sm:$0xf] }
 0x2cc   : > { %v1224_v57 = vshrl.u32 %v2403_v14, 16  ;;  %v1227_v58 = vshll.u32 %v2403_v14, 16  ;;  %v1252_v26 = vsel %vm2410_vm1, %v1173_v43, %v1714_v17  ;;  %v1258_v59 = vsel %vm2417_vm2, %v1174_v44, %v1716_v38  ;;  %v1740_v14 = vld [vmem:[%s2348_s14 + $0x3c] sm:$0x1] }
 0x2cd   : > { %v1205_v63 = vor.u32 %v1203_v50, %v1202_v48  ;;  %v1206_v62 = vrot.slane %v1202_v48, 4  ;;  %v1213_v0 = vor.u32 %v1211_v34, %v1210_v52  ;;  %v1214_v1 = vrot.slane %v1210_v52, 4  ;;  %1715 = vst [vmem:[%s2348_s14 + $0x8] sm:$0xf] %v1252_v26  ;;  %1717 = vst [vmem:[%s2348_s14 + $0xc] sm:$0x1] %v1258_v59 }
 0x2ce   : > { %v1218_v4 = vrot.slane %v1216_v53, 7  ;;  %v1226_v5 = vrot.slane %v1224_v57, 7  ;;  %v1261_v6 = vsel %vm2410_vm1, %v1181_v8, %v1718_v15  ;;  %v1264_v7 = vsel %vm2417_vm2, %v1182_v16, %v1720_v49 }
 0x2cf   : > { %1719 = vst [vmem:[%s2348_s14 + $0x10] sm:$0xf] %v1261_v6  ;;  %1721 = vst [vmem:[%s2348_s14 + $0x14] sm:$0x1] %v1264_v7  ;;  %v1267_v18 = vsel %vm2410_vm1, %v1189_v41, %v1722_v40  ;;  %v1270_v22 = vsel %vm2417_vm2, %v1190_v24, %v1724_v46  ;;  %v1273_v9 = vsel %vm2410_vm1, %v1197_v19, %v1726_v42  ;;  %v1471_v43 = vstv %s2399_s28 }
 0x2d0   : > { %v1276_v11 = vsel %vm2417_vm2, %v1198_v55, %v1728_v54  ;;  %v1221_v20 = vor.u32 %v1219_v31, %v1218_v4  ;;  %v1222_v21 = vrot.slane %v1218_v4, 4  ;;  %v1229_v25 = vor.u32 %v1227_v58, %v1226_v5  ;;  %1723 = vst [vmem:[%s2348_s14 + $0x18] sm:$0xf] %v1267_v18  ;;  %1725 = vst [vmem:[%s2348_s14 + $0x1c] sm:$0x1] %v1270_v22 }
 0x2d1   : > { %v1230_v27 = vrot.slane %v1226_v5, 4  ;;  %1727 = vst [vmem:[%s2348_s14 + $0x20] sm:$0xf] %v1273_v9  ;;  %1729 = vst [vmem:[%s2348_s14 + $0x24] sm:$0x1] %v1276_v11  ;;  %v1279_v37 = vsel %vm2410_vm1, %v1205_v63, %v1730_v60  ;;  %v1282_v50 = vsel %vm2417_vm2, %v1206_v62, %v1732_v61  ;;  %v1285_v17 = vsel %vm2410_vm1, %v1213_v0, %v1734_v2 }
 0x2d2   : > { %v1288_v28 = vsel %vm2417_vm2, %v1214_v1, %v1736_v3  ;;  %1731 = vst [vmem:[%s2348_s14 + $0x28] sm:$0xf] %v1279_v37  ;;  %1733 = vst [vmem:[%s2348_s14 + $0x2c] sm:$0x1] %v1282_v50  ;;  %v1291_v30 = vsel %vm2410_vm1, %v1221_v20, %v1738_v10  ;;  %v1294_v33 = vsel %vm2417_vm2, %v1222_v21, %v1740_v14  ;;  %v1482_v44 = vstv %s1481_s8 }
 0x2d3   : > { %1735 = vst [vmem:[%s2348_s14 + $0x30] sm:$0xf] %v1285_v17  ;;  %1737 = vst [vmem:[%s2348_s14 + $0x34] sm:$0x1] %v1288_v28  ;;  %v1297_v34 = vsel %vm2410_vm1, %v1229_v25, %v1742_v29  ;;  %v1300_v38 = vsel %vm2417_vm2, %v1230_v27, %v1744_v13  ;;  %1876 = vrsqrt.f32 %v1482_v44  ;;  %v1472_v8 = vsub.f32 %v2234_v32, %v1471_v43 }
 0x2d4   : > { %1739 = vst [vmem:[%s2348_s14 + $0x38] sm:$0xf] %v1291_v30  ;;  %1741 = vst [vmem:[%s2348_s14 + $0x3c] sm:$0x1] %v1294_v33  ;;  %v1473_v16 = vsub.f32 %v2246_v39, %v1471_v43  ;;  %v1474_v15 = vsub.f32 %v2232_v56, %v1471_v43  ;;  %v1475_v35 = vsub.f32 %v2242_v36, %v1471_v43 }
 0x2d5   : > { %1743 = vst [vmem:[%s2348_s14 + $0x40] sm:$0xf] %v1297_v34  ;;  %1745 = vst [vmem:[%s2348_s14 + $0x44] sm:$0x1] %v1300_v38  ;;  %v1476_v49 = vsub.f32 %v2257_v47, %v1471_v43  ;;  %v1477_v12 = vsub.f32 %v2267_v23, %v1471_v43  ;;  %v1478_v41 = vsub.f32 %v2255_v45, %v1471_v43 }
 0x2d6   : > { %v1479_v24 = vsub.f32 %v2265_v51, %v1471_v43 }
 0x2dd   : > { %v1877_v19 = vpop.eup %1876 }
 0x2de   : > { %1823 = vpush %v1877_v19 }
 0x30f   : > { %s1824_s10 = spop %1823 }
 0x310   : > { %v1485_v55 = vstv %s1824_s10 }
 0x311   : > { %v1486_v32 = vmul.f32 %v1485_v55, %v1472_v8  ;;  %v1487_v40 = vmul.f32 %v1485_v55, %v1473_v16  ;;  %v1488_v39 = vmul.f32 %v1485_v55, %v1474_v15  ;;  %v1489_v46 = vmul.f32 %v1485_v55, %v1475_v35 }
 0x312   : > { %v1490_v56 = vmul.f32 %v1485_v55, %v1476_v49  ;;  %v1491_v36 = vmul.f32 %v1485_v55, %v1477_v12  ;;  %v1492_v47 = vmul.f32 %v1485_v55, %v1478_v41  ;;  %v1493_v23 = vmul.f32 %v1485_v55, %v1479_v24 }
 0x313   : > { %v1494_v45 = vpack.c.bf16 %v1486_v32, %v1486_v32  ;;  %v1495_v42 = vpack.c.bf16 %v1487_v40, %v1487_v40  ;;  %v1496_v51 = vpack.c.bf16 %v1488_v39, %v1488_v39  ;;  %v1497_v48 = vpack.c.bf16 %v1489_v46, %v1489_v46 }
 0x314   : > { %v1498_v52 = vpack.c.bf16 %v1490_v56, %v1490_v56  ;;  %v1499_v53 = vpack.c.bf16 %v1491_v36, %v1491_v36  ;;  %v1500_v31 = vpack.c.bf16 %v1492_v47, %v1492_v47  ;;  %v1501_v54 = vpack.c.bf16 %v1493_v23, %v1493_v23 }
 0x315   : > { %1502 = vst.msk [vmem:[%s210_s13] sm:$0xf] %vm1113_vm13, %v1494_v45  ;;  %1503 = vst.msk [vmem:[%s210_s13 + $0x4] sm:$0xf] %vm1113_vm13, %v1495_v42 }
 0x316   : > { %1504 = vst.msk [vmem:[%s210_s13 + $0x8] sm:$0xf] %vm1113_vm13, %v1496_v51  ;;  %1505 = vst.msk [vmem:[%s210_s13 + $0xc] sm:$0xf] %vm1113_vm13, %v1497_v48 }
 0x317   : > { %1506 = vst.msk [vmem:[%s210_s13 + $0x10] sm:$0xf] %vm1113_vm13, %v1498_v52  ;;  %1507 = vst.msk [vmem:[%s210_s13 + $0x14] sm:$0xf] %vm1113_vm13, %v1499_v53 }
 0x318   : > { %1508 = vst.msk [vmem:[%s210_s13 + $0x18] sm:$0xf] %vm1113_vm13, %v1500_v31  ;;  %1509 = vst.msk [vmem:[%s210_s13 + $0x1c] sm:$0xf] %vm1113_vm13, %v1501_v54 }
 0x319 PF: > { %s15_s15 = sadd.s32 1, %s1884_s15  }
 0x31a   : > { %p12_p4 = scmp.ge.s32.totalorder %s15_s15, 4  }
 0x31c   :  { %14 = sbr.rel (!%p12_p4) target bundleno = 1 (0x1), region = 80 }

</bundles_post_ra>
